<compile_context>
chip_gen: v7x
topology: tpu7x:2x2x1
jax: 0.10.0
libtpu: 0.0.40
codegen_flags: <defaults>
</compile_context>

<pallas_src>
import functools

import jax
import jax.numpy as jnp
from jax.experimental import pallas as pl
from jax.experimental.pallas import tpu as pltpu


def attention_kernel(enc_ref, hid_ref, we_ref, wd_ref, bdbe_ref, wf_ref,
                     ctx_ref, alpha_ref, *, num_pixels):
    # enc_ref  : (Bt, P_pad, E_pad) bf16     hid_ref : (Bt, D) f32
    # we_ref   : (E_pad, A_pad)     bf16     wd_ref  : (D, A_pad) bf16
    # bdbe_ref : (1, A_pad) f32 (b_dec + b_enc folded)
    # wf_ref   : (1, A_pad) f32 (full_att weight as a row; b_full dropped)
    # ctx_ref  : (Bt, E_pad) f32             alpha_ref : (Bt, P_pad) f32
    Bt, P_pad, E_pad = enc_ref.shape
    A_pad = we_ref.shape[1]

    enc = enc_ref[...]                                   # (Bt, P_pad, E_pad) bf16
    enc2d = enc.reshape(Bt * P_pad, E_pad)               # layout-preserving (P_pad % 16 == 0)

    # Encoder projection: one bf16 MXU matmul with a real M dim, f32 accumulate.
    enc_att = jnp.dot(enc2d, we_ref[...],
                      preferred_element_type=jnp.float32)            # (Bt*P_pad, A_pad)

    # Decoder projection once per batch block; folded (b_dec + b_enc) added here
    # on the tiny (Bt, A_pad) tensor instead of the (Bt*P, A_pad) one.
    dec_att = jnp.dot(hid_ref[...].astype(jnp.bfloat16), wd_ref[...],
                      preferred_element_type=jnp.float32) + bdbe_ref[...]   # (Bt, A_pad)

    # ReLU(enc_att + dec_att) broadcast over pixels (f32 VPU).
    s = jnp.maximum(enc_att.reshape(Bt, P_pad, A_pad) + dec_att[:, None, :], 0.0)

    # Scores as a lane-dense row: VPU multiply + lane reduce over A
    # (avoids the degenerate (A, 1) MXU matmul).  b_full is dropped: softmax is
    # shift-invariant, so it has no effect on alpha or context.
    a = jnp.sum(s * wf_ref[...], axis=-1)                             # (Bt, P_pad)

    if P_pad != num_pixels:
        # Padded pixels must not steal softmax mass.
        pix = jax.lax.broadcasted_iota(jnp.int32, (Bt, P_pad), 1)
        a = jnp.where(pix < num_pixels, a, -jnp.inf)

    # Softmax over the pixel (lane) axis.  Exact reciprocal: denom is (Bt, 1),
    # so this costs nothing and keeps alpha rows summing to 1.
    a_max = jnp.max(a, axis=-1, keepdims=True)                        # (Bt, 1)
    e = jnp.exp(a - a_max)                                            # (Bt, P_pad)
    denom = jnp.sum(e, axis=-1, keepdims=True)                        # (Bt, 1)
    alpha = e * (1.0 / denom)                                         # (Bt, P_pad)
    alpha_ref[...] = alpha

    # Context: batched (1, P_pad) @ (P_pad, E_pad) bf16 MXU matmul, f32 accumulate.
    ctx = jnp.einsum('bqp,bpe->bqe', alpha[:, None, :].astype(jnp.bfloat16), enc,
                     preferred_element_type=jnp.float32)              # (Bt, 1, E_pad)
    ctx_ref[...] = ctx[:, 0, :]


def _vmem_limit_bytes(Bt, P_pad, E_pad, D, A_pad):
    """Scoped-VMEM request sized from the per-grid-step footprint (double-buffered
    input/weight tiles + live f32 temps + outputs), clamped to a range safe for
    v5e/v6e (128 MiB physical) and modest for v7x (64 MiB physical)."""
    bf16, f32 = 2, 4
    enc_tile = Bt * P_pad * E_pad * bf16 * 2               # enc block, double-buffered
    weights = (E_pad * A_pad + D * A_pad) * bf16 * 2       # resident weights (2 bufs by default)
    smalls = 3 * A_pad * f32 * 2                           # folded bias + wf rows
    temps = 2 * Bt * P_pad * A_pad * f32                   # enc_att + relu temps (f32)
    outs = (Bt * E_pad + Bt * P_pad) * f32 * 2
    need = enc_tile + weights + smalls + temps + outs + (2 << 20)
    return int(min(max(need, 32 * 1024 * 1024), 96 * 1024 * 1024))


def attention_forward(enc_img, hidden_state, params, *, block_b=8):
    # On v7x use block_b=4 (64 MiB VMEM/TC) and keep nb even for 2-TC balance.
    B, P, E = enc_img.shape
    D = hidden_state.shape[1]
    A = params["we"].shape[0]                # PyTorch-style weights: (out, in)

    # Lane-align the attention and encoder dims (exact: padded rows/cols are zero),
    # and pad the pixel axis to a bf16 sublane-friendly multiple so the
    # (Bt, P, E) -> (Bt*P, E) collapse is a pure reshape (no VMEM relayout).
    # At real dims prefer P_pad a multiple of 128/256 for a lane-dense alpha store.
    A_pad = max(128, -(-A // 128) * 128)
    E_pad = max(128, -(-E // 128) * 128)
    P_pad = -(-P // 16) * 16

    f32, bf16 = jnp.float32, jnp.bfloat16

    we_t = jnp.zeros((E_pad, A_pad), f32).at[:E, :A].set(params["we"].T).astype(bf16)
    wd_t = jnp.zeros((D, A_pad), f32).at[:, :A].set(params["wd"].T).astype(bf16)
    # Fold b_enc into b_dec; drop b_full (softmax shift invariance).
    bdbe = jnp.zeros((1, A_pad), f32).at[:, :A].set(
        (params["bd"] + params["be"]).reshape(1, A))
    wf_r = jnp.zeros((1, A_pad), f32).at[:, :A].set(params["wf"].reshape(1, A))

    # Block the batch so each grid step feeds the MXU a real M dim.
    Bt = block_b
    nb = -(-B // Bt)
    B_pad = nb * Bt

    enc_p = jnp.zeros((B_pad, P_pad, E_pad), bf16)
    enc_p = enc_p.at[:B, :P, :E].set(enc_img.astype(bf16))
    hid_p = jnp.zeros((B_pad, D), f32).at[:B].set(hidden_state.astype(f32))

    kernel = functools.partial(attention_kernel, num_pixels=P)

    ctx, alpha = pl.pallas_call(
        kernel,
        out_shape=(jax.ShapeDtypeStruct((B_pad, E_pad), f32),
                   jax.ShapeDtypeStruct((B_pad, P_pad), f32)),
        grid_spec=pltpu.PrefetchScalarGridSpec(
            num_scalar_prefetch=0,
            grid=(nb,),
            in_specs=[
                pl.BlockSpec((Bt, P_pad, E_pad), lambda b: (b, 0, 0)),  # enc block (bf16)
                pl.BlockSpec((Bt, D),            lambda b: (b, 0)),     # hidden block
                pl.BlockSpec((E_pad, A_pad),     lambda b: (0, 0)),     # W_enc^T (resident)
                pl.BlockSpec((D, A_pad),         lambda b: (0, 0)),     # W_dec^T (resident)
                pl.BlockSpec((1, A_pad),         lambda b: (0, 0)),     # b_dec + b_enc
                pl.BlockSpec((1, A_pad),         lambda b: (0, 0)),     # W_full as a row
            ],
            out_specs=[
                pl.BlockSpec((Bt, E_pad), lambda b: (b, 0)),            # context
                pl.BlockSpec((Bt, P_pad), lambda b: (b, 0)),            # alpha (lane-dense)
            ],
        ),
        compiler_params=pltpu.CompilerParams(
            dimension_semantics=("parallel",),                           # megacore/2-TC sharding
            vmem_limit_bytes=_vmem_limit_bytes(Bt, P_pad, E_pad, D, A_pad),
        ),
    )(enc_p, hid_p, we_t, wd_t, bdbe, wf_r)

    return ctx[:B, :E], alpha[:B, :P]


def init_params(key, encoder_dim, decoder_dim, attention_dim):
    """PyTorch-style uniform(-1/sqrt(fan_in), 1/sqrt(fan_in)) init, deterministic."""
    ks = jax.random.split(key, 6)

    def lin(kw, kb, fan_in, fan_out):
        bound = 1.0 / jnp.sqrt(fan_in)
        w = jax.random.uniform(kw, (fan_out, fan_in), jnp.float32, -bound, bound)
        b = jax.random.uniform(kb, (fan_out,), jnp.float32, -bound, bound)
        return w, b

    we, be = lin(ks[0], ks[1], encoder_dim, attention_dim)
    wd, bd = lin(ks[2], ks[3], decoder_dim, attention_dim)
    wf, bf = lin(ks[4], ks[5], attention_dim, 1)
    return {"we": we, "be": be, "wd": wd, "bd": bd, "wf": wf, "bf": bf}


def attention_reference_matched(enc_img, hidden_state, params):
    """Precision-matched reference: same bf16 matmul inputs / f32 accumulation
    (and the same bias folding / b_full drop) as the Pallas kernel."""
    bf16 = jnp.bfloat16
    enc_b = enc_img.astype(bf16)
    enc_att = jnp.einsum('bpe,ea->bpa', enc_b, params["we"].T.astype(bf16),
                         preferred_element_type=jnp.float32)
    dec_att = (jnp.einsum('bd,da->ba', hidden_state.astype(bf16),
                          params["wd"].T.astype(bf16),
                          preferred_element_type=jnp.float32)
               + params["bd"] + params["be"])
    s = jnp.maximum(enc_att + dec_att[:, None, :], 0.0)
    a = jnp.sum(s * params["wf"].reshape(1, 1, -1), axis=-1)
    alpha = jax.nn.softmax(a, axis=-1)
    context = jnp.einsum('bp,bpe->be', alpha.astype(bf16), enc_b,
                         preferred_element_type=jnp.float32)
    return context, alpha


def attention_reference(enc_img, hidden_state, params):
    """Full-f32 (PyTorch-faithful) reference, HIGHEST matmul precision."""
    hp = jax.lax.Precision.HIGHEST
    enc_att = jnp.einsum('bpe,ae->bpa', enc_img, params["we"], precision=hp) + params["be"]
    dec_att = jnp.einsum('bd,ad->ba', hidden_state, params["wd"], precision=hp) + params["bd"]
    s = jnp.maximum(enc_att + dec_att[:, None, :], 0.0)
    a = (jnp.einsum('bpa,oa->bpo', s, params["wf"], precision=hp) + params["bf"])[..., 0]
    alpha = jax.nn.softmax(a, axis=1)
    context = jnp.sum(enc_img * alpha[:, :, None], axis=1)
    return context, alpha


if __name__ == "__main__":
    B, P = 16, 16             # batch, num_pixels (small stand-ins; real P=196)
    encoder_dim = 32
    decoder_dim = 32
    attention_dim = 128       # small lane-aligned stand-in for the module's 1024

    key = jax.random.PRNGKey(0)
    k_enc, k_hid, k_params = jax.random.split(key, 3)

    enc_img = jax.random.normal(k_enc, (B, P, encoder_dim), jnp.float32)
    hidden_state = jax.random.normal(k_hid, (B, decoder_dim), jnp.float32)
    params = init_params(k_params, encoder_dim, decoder_dim, attention_dim)

    ctx, alpha = attention_forward(enc_img, hidden_state, params)
    jax.block_until_ready((ctx, alpha))

    # Tight check against the precision-matched (bf16-input, f32-accumulate) reference.
    ctx_m, alpha_m = attention_reference_matched(enc_img, hidden_state, params)
    assert jnp.allclose(ctx, ctx_m, atol=5e-3, rtol=5e-3), "ctx vs matched reference"
    assert jnp.allclose(alpha, alpha_m, atol=5e-3, rtol=5e-3), "alpha vs matched reference"

    # Loose check against the full-f32 PyTorch-faithful reference (bf16 MXU inputs
    # introduce ~1e-3..1e-2-level differences by design).
    ctx_f, alpha_f = attention_reference(enc_img, hidden_state, params)
    assert jnp.allclose(ctx, ctx_f, atol=3e-2, rtol=3e-2), "ctx vs f32 reference"
    assert jnp.allclose(alpha, alpha_f, atol=3e-2, rtol=3e-2), "alpha vs f32 reference"

    print("KERNEL_OK")
</pallas_src>

<mosaic_0001>
module attributes {stable_mosaic.version = 11 : i64} {
  func.func @attention_kernel(%arg0: i32, %arg1: memref<8x16x128xbf16, #tpu.memory_space<vmem>>, %arg2: memref<8x32xf32, #tpu.memory_space<vmem>>, %arg3: memref<128x128xbf16, #tpu.memory_space<vmem>>, %arg4: memref<32x128xbf16, #tpu.memory_space<vmem>>, %arg5: memref<1x128xf32, #tpu.memory_space<vmem>>, %arg6: memref<1x128xf32, #tpu.memory_space<vmem>>, %arg7: memref<8x128xf32, #tpu.memory_space<vmem>>, %arg8: memref<8x16xf32, #tpu.memory_space<vmem>>) attributes {dimension_semantics = [#tpu.dimension_semantics<parallel>], iteration_bounds = array<i64: 2>, scalar_prefetch = 0 : i64, scratch_operands = 0 : i64, tpu.core_type = #tpu.core_type<tc>, window_params = [{transform_indices = @transform_0, window_bounds = array<i64: 8, 16, 128>}, {transform_indices = @transform_1, window_bounds = array<i64: 8, 32>}, {pipeline_mode = #tpu.pipeline_mode<synchronous>, transform_indices = @transform_2, window_bounds = array<i64: 128, 128>}, {pipeline_mode = #tpu.pipeline_mode<synchronous>, transform_indices = @transform_3, window_bounds = array<i64: 32, 128>}, {pipeline_mode = #tpu.pipeline_mode<synchronous>, transform_indices = @transform_4, window_bounds = array<i64: 1, 128>}, {pipeline_mode = #tpu.pipeline_mode<synchronous>, transform_indices = @transform_5, window_bounds = array<i64: 1, 128>}, {transform_indices = @transform_6, window_bounds = array<i64: 8, 128>}, {transform_indices = @transform_7, window_bounds = array<i64: 8, 16>}]} {
    %c0 = arith.constant 0 : index
    %c0_0 = arith.constant 0 : index
    %c0_1 = arith.constant 0 : index
    %0 = vector.load %arg1[%c0, %c0_0, %c0_1] : memref<8x16x128xbf16, #tpu.memory_space<vmem>>, vector<8x16x128xbf16>
    %1 = vector.shape_cast %0 : vector<8x16x128xbf16> to vector<128x128xbf16>
    %c0_2 = arith.constant 0 : index
    %c0_3 = arith.constant 0 : index
    %2 = vector.load %arg3[%c0_2, %c0_3] : memref<128x128xbf16, #tpu.memory_space<vmem>>, vector<128x128xbf16>
    %cst = arith.constant dense<0.000000e+00> : vector<128x128xf32>
    %3 = tpu.matmul %1, %2, %cst {dimension_numbers = #tpu.dot_dimension_numbers<[1], [0], [0], [1], [0, 0, 1, 1], [], []>} : vector<128x128xbf16>, vector<128x128xbf16>, vector<128x128xf32> -> vector<128x128xf32>
    %c0_4 = arith.constant 0 : index
    %c0_5 = arith.constant 0 : index
    %4 = vector.load %arg2[%c0_4, %c0_5] : memref<8x32xf32, #tpu.memory_space<vmem>>, vector<8x32xf32>
    %5 = arith.truncf %4 : vector<8x32xf32> to vector<8x32xbf16>
    %c0_6 = arith.constant 0 : index
    %c0_7 = arith.constant 0 : index
    %6 = vector.load %arg4[%c0_6, %c0_7] : memref<32x128xbf16, #tpu.memory_space<vmem>>, vector<32x128xbf16>
    %cst_8 = arith.constant dense<0.000000e+00> : vector<8x128xf32>
    %7 = tpu.matmul %5, %6, %cst_8 {dimension_numbers = #tpu.dot_dimension_numbers<[1], [0], [0], [1], [0, 0, 1, 1], [], []>} : vector<8x32xbf16>, vector<32x128xbf16>, vector<8x128xf32> -> vector<8x128xf32>
    %c0_9 = arith.constant 0 : index
    %c0_10 = arith.constant 0 : index
    %8 = vector.load %arg5[%c0_9, %c0_10] : memref<1x128xf32, #tpu.memory_space<vmem>>, vector<1x128xf32>
    %9 = vector.broadcast %8 : vector<1x128xf32> to vector<8x128xf32>
    %10 = arith.addf %7, %9 : vector<8x128xf32>
    %11 = vector.shape_cast %3 : vector<128x128xf32> to vector<8x16x128xf32>
    %12 = vector.shape_cast %10 : vector<8x128xf32> to vector<8x1x128xf32>
    %13 = vector.broadcast %12 : vector<8x1x128xf32> to vector<8x16x128xf32>
    %14 = arith.addf %11, %13 : vector<8x16x128xf32>
    %cst_11 = arith.constant 0.000000e+00 : f32
    %15 = vector.broadcast %cst_11 : f32 to vector<8x16x128xf32>
    %16 = arith.maximumf %14, %15 : vector<8x16x128xf32>
    %c0_12 = arith.constant 0 : index
    %c0_13 = arith.constant 0 : index
    %17 = vector.load %arg6[%c0_12, %c0_13] : memref<1x128xf32, #tpu.memory_space<vmem>>, vector<1x128xf32>
    %18 = vector.shape_cast %17 : vector<1x128xf32> to vector<1x1x128xf32>
    %19 = vector.broadcast %18 : vector<1x1x128xf32> to vector<8x16x128xf32>
    %20 = arith.mulf %16, %19 : vector<8x16x128xf32>
    %cst_14 = arith.constant dense<0.000000e+00> : vector<8x16xf32>
    %21 = vector.multi_reduction <add>, %20, %cst_14 [2] : vector<8x16x128xf32> to vector<8x16xf32>
    %cst_15 = arith.constant dense<0xFF800000> : vector<8xf32>
    %22 = vector.multi_reduction <maximumf>, %21, %cst_15 [1] : vector<8x16xf32> to vector<8xf32>
    %23 = vector.shape_cast %22 : vector<8xf32> to vector<8x1xf32>
    %24 = vector.broadcast %23 : vector<8x1xf32> to vector<8x16xf32>
    %25 = arith.subf %21, %24 : vector<8x16xf32>
    %26 = math.exp %25 : vector<8x16xf32>
    %cst_16 = arith.constant dense<0.000000e+00> : vector<8xf32>
    %27 = vector.multi_reduction <add>, %26, %cst_16 [1] : vector<8x16xf32> to vector<8xf32>
    %28 = vector.shape_cast %27 : vector<8xf32> to vector<8x1xf32>
    %cst_17 = arith.constant 1.000000e+00 : f32
    %29 = vector.broadcast %cst_17 : f32 to vector<8x1xf32>
    %30 = arith.divf %29, %28 : vector<8x1xf32>
    %31 = vector.broadcast %30 : vector<8x1xf32> to vector<8x16xf32>
    %32 = arith.mulf %26, %31 : vector<8x16xf32>
    %c0_18 = arith.constant 0 : index
    %c0_19 = arith.constant 0 : index
    %33 = vector.load %arg8[%c0_18, %c0_19] : memref<8x16xf32, #tpu.memory_space<vmem>>, vector<8x16xf32>
    tpu.vector_store %arg8[%c0_18, %c0_19], %32 {strides = array<i32>} : memref<8x16xf32, #tpu.memory_space<vmem>>, vector<8x16xf32>,
    %34 = vector.shape_cast %32 : vector<8x16xf32> to vector<8x1x16xf32>
    %35 = arith.truncf %34 : vector<8x1x16xf32> to vector<8x1x16xbf16>
    "tpu.trace_start"() <{level = 10 : i32, message = "bqp,bpe->bqe"}> : () -> ()
    %cst_20 = arith.constant dense<0.000000e+00> : vector<8x1x128xf32>
    %36 = tpu.matmul %35, %0, %cst_20 {dimension_numbers = #tpu.dot_dimension_numbers<[2], [1], [1], [2], [0, 0, 0, 1, 1, 2], [0], [0]>} : vector<8x1x16xbf16>, vector<8x16x128xbf16>, vector<8x1x128xf32> -> vector<8x1x128xf32>
    "tpu.trace_stop"() : () -> ()
    %37 = vector.shape_cast %36 : vector<8x1x128xf32> to vector<8x128xf32>
    %c0_21 = arith.constant 0 : index
    %c0_22 = arith.constant 0 : index
    %38 = vector.load %arg7[%c0_21, %c0_22] : memref<8x128xf32, #tpu.memory_space<vmem>>, vector<8x128xf32>
    tpu.vector_store %arg7[%c0_21, %c0_22], %37 {strides = array<i32>} : memref<8x128xf32, #tpu.memory_space<vmem>>, vector<8x128xf32>,
    return
  }
  func.func @transform_0(%arg0: i32) -> (i32, i32, i32) {
    %c0_i32 = arith.constant 0 : i32
    %c0_i32_0 = arith.constant 0 : i32
    %c0_i32_1 = arith.constant 0 : i32
    return %arg0, %c0_i32, %c0_i32_0 : i32, i32, i32
  }
  func.func @transform_1(%arg0: i32) -> (i32, i32) {
    %c0_i32 = arith.constant 0 : i32
    %c0_i32_0 = arith.constant 0 : i32
    return %arg0, %c0_i32 : i32, i32
  }
  func.func @transform_2(%arg0: i32) -> (i32, i32) {
    %c0_i32 = arith.constant 0 : i32
    %c0_i32_0 = arith.constant 0 : i32
    %c0_i32_1 = arith.constant 0 : i32
    return %c0_i32, %c0_i32_0 : i32, i32
  }
  func.func @transform_3(%arg0: i32) -> (i32, i32) {
    %c0_i32 = arith.constant 0 : i32
    %c0_i32_0 = arith.constant 0 : i32
    %c0_i32_1 = arith.constant 0 : i32
    return %c0_i32, %c0_i32_0 : i32, i32
  }
  func.func @transform_4(%arg0: i32) -> (i32, i32) {
    %c0_i32 = arith.constant 0 : i32
    %c0_i32_0 = arith.constant 0 : i32
    %c0_i32_1 = arith.constant 0 : i32
    return %c0_i32, %c0_i32_0 : i32, i32
  }
  func.func @transform_5(%arg0: i32) -> (i32, i32) {
    %c0_i32 = arith.constant 0 : i32
    %c0_i32_0 = arith.constant 0 : i32
    %c0_i32_1 = arith.constant 0 : i32
    return %c0_i32, %c0_i32_0 : i32, i32
  }
  func.func @transform_6(%arg0: i32) -> (i32, i32) {
    %c0_i32 = arith.constant 0 : i32
    %c0_i32_0 = arith.constant 0 : i32
    return %arg0, %c0_i32 : i32, i32
  }
  func.func @transform_7(%arg0: i32) -> (i32, i32) {
    %c0_i32 = arith.constant 0 : i32
    %c0_i32_0 = arith.constant 0 : i32
    return %arg0, %c0_i32 : i32, i32
  }
}

</mosaic_0001>

<bundles_post_ra>
// kernel: tpu_custom_call.1
= control target key start
LH: loop header
LB: loop body
LE: loop exit
PB: predicated region body
PF: predicated region fallthrough
CT: control target
= control target key end

     0   :  { %s3443_s0 = inlined_call_operand.hbm [shape: bf16[16,16,128], index: 0, kind: input, shape index: {}]   ;;  %s3444_s1 = inlined_call_operand.hbm [shape: f32[16,32], index: 1, kind: input, shape index: {}]   ;;  %s3445_s2 = inlined_call_operand.hbm [shape: bf16[128,128], index: 2, kind: input, shape index: {}]   ;;  %s3446_s3 = inlined_call_operand.hbm [shape: bf16[32,128], index: 3, kind: input, shape index: {}]   ;;  %s3447_s4 = inlined_call_operand.vmem [shape: f32[1,128], index: 4, kind: input, shape index: {}]   ;;  %s3448_s5 = inlined_call_operand.vmem [shape: f32[1,128], index: 5, kind: input, shape index: {}]   ;;  %s3449_s6 = inlined_call_operand.hbm [shape: f32[16,128], index: 6, kind: output, shape index: {0}]   ;;  %s3450_s7 = inlined_call_operand.hbm [shape: f32[16,16], index: 7, kind: output, shape index: {1}]  }
   0x1   :  { %3458 = sst [smem:[#allocation21_spill]] %s3443_s0 }
   0x2   :  { %3459 = sst [smem:[#allocation22_spill]] %s3445_s2 }
   0x3   :  { %3460 = sst [smem:[#allocation23_spill]] %s3446_s3 }
   0x4   :  { %13 = vsyncpa [#allocation3], 0 }
   0x5   :  { %15 = vsyncpa [#allocation3 + $0x1], 0 }
   0x6   :  { %16 = vsyncpa [#allocation6], 0 }
   0x7   :  { %18 = vsyncpa [#allocation6 + $0x1], 0 }
   0x8   :  { %19 = vsyncpa [#allocation9], 0 }
   0x9   :  { %20 = vsyncpa [#allocation4], 0 }
   0xa   :  { %22 = vsyncpa [#allocation4 + $0x1], 0 }
   0xb   :  { %23 = vsyncpa [#allocation12], 0 }
   0xc   :  { %25 = vsyncpa [#allocation12 + $0x1], 0  ;;  %s2698_s24 = smov 0   ;;  %s2700_s25 = smov 0  }
   0xd   :  { %s2702_s26 = smov 0   ;;  %s2704_s27 = smov 0  }
   0xe LB: > { %3461 = sst [smem:[#allocation19_spill]] %s2640_s26  ;;  %s2719_s28 = sadd.s32 4294967295, %s2644_s27   ;;  %s2644_s27 = sphi %s2704_s27, %s3489_s27   ;;  %s2640_s26 = sphi %s2702_s26, %s3486_s26   ;;  %s2636_s25 = sphi %s2700_s25, %s3488_s25   ;;  %s2632_s24 = sphi %s2698_s24, %s3487_s24  }
   0xf   : > { %s2103_s29 = sadd.s32 4294967294, %s2644_s27   ;;  %p51_p0 = scmp.ne.s32.totalorder %s2636_s25, %s2632_s24 }
  0x10   : > { %p3451_p1 = scmp.eq.s32.totalorder %s2719_s28, 0  ;;  %p191_p3 = scmp.eq.s32.totalorder %s2103_s29, 1 }
  0x11   : > { %p2104_p5 = scmp.ge.s32.totalorder %s2644_s27, 1  ;;  %p224_p7 = scmp.lt.s32.totalorder %s2644_s27, 3 }
  0x12   : > { %p2728_p4 = por %p3451_p1, %p51_p0  ;;  %p2733_p6 = por %p191_p3, %p51_p0 }
  0x13   : > { %p2738_p8 = pnand %p2104_p5, %p224_p7  ;;  %s2646_s10 = smov [#allocation7]  }
  0x14   : > { %s3462_s30 = scalar_select %p2728_p4, 1, 0 }
  0x15   : > { %s3463_s8 = scalar_select %p2733_p6, 1, 0 }
  0x16   : > { %s3464_s9 = scalar_select %p2738_p8, 1, 0 }
  0x17   : > { %s236_s11 = sshll.u32 %s2646_s10, 4  ;;  %p2297_p9 = pneg %p2738_p8  ;;  %s2742_s11 = int_to_ptr.vmem [resolvable:$true] %s236_s11 }
  0x18   : > { %s2647_s13 = smov [#allocation8]   ;;  %s3466_s2 = sld [smem:[#allocation22_spill]] }
  0x19   : > { %p2749_p11 = pnand %p2297_p9, %p3451_p1  ;;  %s249_s14 = sshll.u32 %s2647_s13, 4  ;;  %s2753_s14 = int_to_ptr.vmem [resolvable:$true] %s249_s14 }
  0x1b   : > { %p2420_p13 = pneg %p2749_p11 }
  0x1e   : > { %s2418_s17 = scalar_lea.hbm %s3466_s2, 1024 }
  0x1f   : > { %p2419_p12 = scmp.ne.s32.totalorder %s3466_s2, %s2418_s17  ;;  %p2425_p5 = scmp.lt.u32.totalorder %s2418_s17, %s3466_s2 }
  0x21   : > { %p2421_p0 = pnand %p2420_p13, %p2419_p12 }
  0x23   : > { %p2422_p3 = pneg %p2421_p0 }
  0x25   : > { %p2427_p7 = pnand %p2425_p5, %p2422_p3 }
  0x27   : > { %2430 = shalt.err (!%p2427_p7)
}
  0x28   : > { %s2431_s22 = scalar_lea.vmem %s2742_s11, 1024  ;;  %p2439_p2 = scmp.lt.s32.totalorder %s2742_s11, %s2742_s11 }
  0x29   : > { %p2432_p9 = scmp.ne.s32.totalorder %s2742_s11, %s2431_s22  ;;  %p2440_p12 = scmp.lt.s32.totalorder %s2431_s22, %s2431_s22 }
  0x2b   : > { %p2434_p10 = pnand %p2432_p9, %p2420_p13  ;;  %p2441_p0 = por %p2440_p12, %p2439_p2 }
  0x2d   : > { %p2435_p1 = pneg %p2434_p10 }
  0x2f   : > { %p2442_p6 = pnand %p2441_p0, %p2435_p1 }
  0x31   : > { %2445 = shalt.err (!%p2442_p6)
}
  0x32   : > { %s3452_s23 = smov 64   ;;  %s3453_s29 = smov 4  }
  0x33   : > { %2300 = dma.hbm_to_vmem [thread:$0]  (!%p2749_p11), %s3466_s2, 1024, %s2742_s11, [#allocation6], %s3452_s23, %s3452_s23, %s3453_s29  }
  0x34   : > { %s3467_s3 = sld [smem:[#allocation23_spill]] }
  0x3a   : > { %s2446_s17 = scalar_lea.hbm %s3467_s3, 256 }
  0x3b   : > { %p2447_p1 = scmp.ne.s32.totalorder %s3467_s3, %s2446_s17  ;;  %p2453_p10 = scmp.lt.u32.totalorder %s2446_s17, %s3467_s3 }
  0x3d   : > { %p2449_p2 = pnand %p2447_p1, %p2420_p13 }
  0x3f   : > { %p2450_p6 = pneg %p2449_p2 }
  0x41   : > { %p2455_p3 = pnand %p2453_p10, %p2450_p6 }
  0x43   : > { %2458 = shalt.err (!%p2455_p3)
}
  0x44   : > { %s2459_s11 = scalar_lea.vmem %s2753_s14, 256  ;;  %p2467_p12 = scmp.lt.s32.totalorder %s2753_s14, %s2753_s14 }
  0x45   : > { %p2460_p5 = scmp.ne.s32.totalorder %s2753_s14, %s2459_s11  ;;  %p2468_p0 = scmp.lt.s32.totalorder %s2459_s11, %s2459_s11 }
  0x47   : > { %p2462_p7 = pnand %p2460_p5, %p2420_p13  ;;  %p2469_p1 = por %p2468_p0, %p2467_p12 }
  0x49   : > { %p2463_p9 = pneg %p2462_p7 }
  0x4b   : > { %p2470_p2 = pnand %p2469_p1, %p2463_p9 }
  0x4d   : > { %2473 = shalt.err (!%p2470_p2)
}
  0x4e   : > { %2303 = dma.hbm_to_vmem [thread:$0]  (!%p2749_p11), %s3467_s3, 256, %s2753_s14, [#allocation9], %s3452_s23, %s3452_s23, %s3453_s29  }
  0x4f   : > { %s2814_s12 = sadd.s32 1, %s2644_s27   ;;  %s38_s13 = sadd.s32 1, %s2640_s26 }
  0x50   : > { %s35_s15 = ssub.s32 %s2644_s27, %s2814_s12  ;;  %p45_p13 = scmp.ne.s32.totalorder %s2640_s26, %s2636_s25 }
  0x51   : > { %p36_p6 = scmp.eq.s32.totalorder %s35_s15, 0  ;;  %p46_p10 = scmp.eq.s32.totalorder %s2644_s27, 0 }
  0x52   : > { %p3468_p3 = scmp.eq.s32.totalorder %s2719_s28, 1  ;;  %p2320_p7 = scmp.lt.s32.totalorder %s2644_s27, 2 }
  0x53   : > { %s2830_s17 = scalar_select %p36_p6, %s2640_s26, %s38_s13  }
  0x54   : > { %p2824_p5 = por %p3468_p3, %p45_p13  ;;  %p47_p9 = por %p46_p10, %p45_p13 }
  0x55   : > { %3470 = sst [smem:[#allocation20_spill]] %s2830_s17  ;;  %s2833_s18 = sand.u32 1, %s2640_s26  }
  0x56   : > { %s3469_s16 = scalar_select %p2824_p5, 1, 0 }
  0x57   : > { %s2108_s14 = sshll.u32 %s2833_s18, 6  ;;  %s2157_s19 = sshll.u32 %s2644_s27, 10 }
  0x58   : > { %s3471_s0 = sld [smem:[#allocation21_spill]]  ;;  %s273_s22 = scalar_lea.vmem [#allocation2], %s2108_s14 }
  0x59   : > { %s281_s10 = sshll.u32 %s273_s22, 4  ;;  %p2844_p11 = pnand %p2320_p7, %p47_p9  ;;  %s2842_s10 = int_to_ptr.vmem [resolvable:$true] %s281_s10 }
  0x5a   : > { %s2112_s23 = sshll.u32 %s2833_s18, 3  ;;  %s270_s29 = scalar_lea.sflag [#allocation3], %s2833_s18 }
  0x5b   : > { %p2476_p0 = pneg %p2844_p11 }
  0x5e   : > { %s2840_s11 = scalar_lea.hbm %s3471_s0, %s2157_s19  ;;  %s2479_s21 = scalar_lea.hbm %s3471_s0, 2048 }
  0x5f   : > { %s2474_s20 = scalar_lea.hbm %s2840_s11, 1024  ;;  %p2480_p13 = scmp.lt.u32.totalorder %s2840_s11, %s3471_s0 }
  0x60   : > { %p2475_p12 = scmp.ne.s32.totalorder %s2840_s11, %s2474_s20  ;;  %p2481_p6 = scmp.lt.u32.totalorder %s2479_s21, %s2474_s20 }
  0x61   : > { %p2483_p3 = scmp.lt.u32.totalorder %s2474_s20, %s2840_s11 }
  0x62   : > { %p2477_p1 = pnand %p2476_p0, %p2475_p12  ;;  %p2482_p10 = por %p2481_p6, %p2480_p13 }
  0x64   : > { %p2478_p2 = pneg %p2477_p1  ;;  %p2484_p7 = por %p2483_p3, %p2482_p10 }
  0x66   : > { %p2485_p9 = pnand %p2484_p7, %p2478_p2 }
  0x68   : > { %2488 = shalt.err (!%p2485_p9)
}
  0x69   : > { %s2489_s15 = scalar_lea.vmem %s2842_s10, 1024  ;;  %s2650_s14 = smov [#allocation2]  }
  0x6a   : > { %p2490_p12 = scmp.ne.s32.totalorder %s2842_s10, %s2489_s15  ;;  %s2494_s19 = sshll.u32 %s2650_s14, 4  ;;  %s2495_s19 = int_to_ptr.vmem [resolvable:$false] %s2494_s19 }
  0x6b   : > { %s2496_s2 = scalar_lea.vmem %s2495_s19, 2048  ;;  %p2497_p4 = scmp.lt.s32.totalorder %s2842_s10, %s2495_s19 }
  0x6c   : > { %p2492_p1 = pnand %p2490_p12, %p2476_p0  ;;  %p2498_p13 = scmp.lt.s32.totalorder %s2496_s2, %s2489_s15 }
  0x6e   : > { %p2493_p5 = pneg %p2492_p1  ;;  %p2499_p6 = por %p2498_p13, %p2497_p4 }
  0x70   : > { %p2500_p10 = pnand %p2499_p6, %p2493_p5 }
  0x72   : > { %2503 = shalt.err (!%p2500_p10)
}
  0x73   : > { %s3473_s20 = smov 4   ;;  %s3474_s21 = smov 64  }
  0x74   : > { %2307 = dma.hbm_to_vmem [thread:$0]  (!%p2844_p11), %s2840_s11, 1024, %s2842_s10, %s270_s29, %s3474_s21, %s3474_s21, %s3473_s20  }
  0x75   : > { %s2113_s22 = sshll.u32 %s2644_s27, 7  ;;  %s295_s2 = scalar_lea.vmem [#allocation5], %s2112_s23 }
  0x76   : > { %s2885_s19 = scalar_lea.hbm %s3444_s1, %s2113_s22  ;;  %s302_s0 = sshll.u32 %s295_s2, 4  ;;  %s303_s0 = int_to_ptr.vmem [resolvable:$true] %s302_s0 }
  0x77   : > { %s3475_s3 = sand.u32 1, %s2644_s27   ;;  %s2504_s26 = scalar_lea.hbm %s2885_s19, 128 }
  0x78   : > { %s292_s17 = scalar_lea.sflag [#allocation6], %s3475_s3  ;;  %p2505_p4 = scmp.ne.s32.totalorder %s2885_s19, %s2504_s26 }
  0x79   : > { %s2509_s10 = scalar_lea.hbm %s3444_s1, 256  ;;  %p2510_p3 = scmp.lt.u32.totalorder %s2885_s19, %s3444_s1 }
  0x7a   : > { %p2507_p5 = pnand %p2505_p4, %p2476_p0  ;;  %p2511_p7 = scmp.lt.u32.totalorder %s2509_s10, %s2504_s26 }
  0x7b   : > { %p2513_p12 = scmp.lt.u32.totalorder %s2504_s26, %s2885_s19 }
  0x7c   : > { %p2508_p2 = pneg %p2507_p5  ;;  %p2512_p9 = por %p2511_p7, %p2510_p3 }
  0x7e   : > { %p2514_p1 = por %p2513_p12, %p2512_p9 }
  0x80   : > { %p2515_p13 = pnand %p2514_p1, %p2508_p2 }
  0x82   : > { %2518 = shalt.err (!%p2515_p13)
}
  0x83   : > { %s2519_s3 = scalar_lea.vmem %s303_s0, 128  ;;  %s2651_s23 = smov [#allocation5]  }
  0x84   : > { %p2520_p6 = scmp.ne.s32.totalorder %s303_s0, %s2519_s3  ;;  %s2524_s21 = sshll.u32 %s2651_s23, 4  ;;  %s2525_s21 = int_to_ptr.vmem [resolvable:$false] %s2524_s21 }
  0x85   : > { %s2526_s22 = scalar_lea.vmem %s2525_s21, 256  ;;  %p2527_p5 = scmp.lt.s32.totalorder %s303_s0, %s2525_s21 }
  0x86   : > { %p2522_p10 = pnand %p2520_p6, %p2476_p0  ;;  %p2528_p8 = scmp.lt.s32.totalorder %s2526_s22, %s2519_s3 }
  0x88   : > { %p2523_p4 = pneg %p2522_p10  ;;  %p2529_p3 = por %p2528_p8, %p2527_p5 }
  0x8a   : > { %p2530_p7 = pnand %p2529_p3, %p2523_p4 }
  0x8c   : > { %2533 = shalt.err (!%p2530_p7)
}
  0x8d   : > { %2310 = dma.hbm_to_vmem [thread:$0]  (!%p2844_p11), %s2885_s19, 128, %s303_s0, %s292_s17  }
  0x8e   : > { %p3476_p2 = scmp.ne.s32.totalorder %s3464_s9, 0 }
  0x8f   : > { %s2913_s26 = sand.u32 (!%p3476_p2), 1, %s2636_s25   ;;  %p3477_p8 = scmp.ne.s32.totalorder (!%p3476_p2), %s3462_s30, 0 }
  0x90   : > { %311 = sbr.rel (%p3476_p2) target bundleno = 1503 (0x5df), region = 44  ;;  %s2115_s14 = sshll.u32 (!%p3476_p2), %s2913_s26, 6 }
  0x91   : > { %s314_s15 = scalar_lea.sflag (!%p3476_p2), [#allocation3], %s2913_s26  ;;  %s2917_s2 = scalar_lea.vmem (!%p3476_p2), [#allocation2], %s2115_s14 }
  0x97   : > { %2607 = dma.done.wait (%p3477_p8), %s314_s15, 1024  }
  0x98   : > { %2609 = vsyncadd (%p3477_p8), %s314_s15, 4294966272  ;;  %s322_s0 = sand.u32 1, %s2719_s28   ;;  %s2925_s9 = sshll.u32 %s2913_s26, 3 }
  0x99   : > { %s323_s17 = scalar_lea.sflag [#allocation6], %s322_s0  ;;  %s326_s13 = scalar_lea.vmem [#allocation5], %s2925_s9 }
  0x9a   : > { %2611 = dma.done.wait (%p3477_p8), %s323_s17, 128  }
  0x9b   : > { %2613 = vsyncadd (%p3477_p8), %s323_s17, 4294967168  ;;  %p3478_p11 = scmp.eq.s32.totalorder %s2719_s28, 0 }
  0x9d   : > { %2615 = dma.done.wait (%p3478_p11), [#allocation6], 1024   ;;  %p3479_p0 = pmov %p3478_p11 }
  0x9f   : > { %2617 = vsyncadd (%p3479_p0), [#allocation6], 4294966272  ;;  %p3480_p9 = pmov %p3479_p0 }
  0xa0   : > { %p3481_p12 = pmov %p3479_p0 }
  0xa1   : > { %2619 = dma.done.wait (%p3480_p9), [#allocation9], 256  }
  0xa2   : > { %2621 = vsyncadd (%p3481_p12), [#allocation9], 4294967040  ;;  %v2652_v0 = vmov 0.0   ;;  %vm2653_vm0 = vmmov 0   ;;  %v2366_v1 = vld [vmem:[#allocation7] sm:$0xff]   ;;  %v2367_v2 = vld [vmem:[#allocation7 + $0x8] sm:$0xff]   ;;  %v676_v23 = vlaneseq }
  0xa3   : > { %2225 = vmatprep.subr.bf16.mxu1 %v2652_v0  ;;  %2229 = vmatprep.mubr.msk.bf16.mxu1 %vm2653_vm0, %v2652_v0  ;;  %v2368_v3 = vld [vmem:[#allocation7 + $0x10] sm:$0xff]   ;;  %v2370_v4 = vld [vmem:[#allocation8] sm:$0xff]   ;;  %v2372_v5 = vld [vmem:[#allocation8 + $0x8] sm:$0xff]   ;;  %vm627_vm1 = vcmask 261120   ;;  %v2654_v21 = vmov 1966171168  }
  0xa4   : > { %2193 = vmatprep.subr.bf16.mxu0 %v2366_v1  ;;  %2226 = vmatpush3.bf16.msra.mxu1 %v2370_v4  ;;  %v2369_v6 = vld [vmem:[#allocation7 + $0x18] sm:$0xff]   ;;  %v2376_v9 = vld [vmem:[%s2917_s2] sm:$0xff]   ;;  %v2371_v10 = vld [vmem:[#allocation7 + $0x20] sm:$0xff]   ;;  %v674_v22 = vunpack.c.l.s4 %v2654_v21  ;;  %v2978_v25 = vshrl.u32 %v676_v23, 7  ;;  %vm875_vm2 = vcmask 130112   ;;  %vm940_vm3 = vcmask 1041409  }
  0xa5   : > { %2194 = vmatpush3.bf16.msra.mxu0 %v2366_v1  ;;  %2227 = vmatprep.subr.bf16.mxu1 %v2652_v0  ;;  %v602_v7 = vld [vmem:[%s326_s13] sm:$0xff]  ;;  %v2373_v11 = vld [vmem:[#allocation7 + $0x28] sm:$0xff]   ;;  %v2953_v15 = vld [vmem:[%s2917_s2 + $0x10] sm:$0xff]   ;;  %vm942_vm4 = vcmask 1042434   ;;  %vm944_vm5 = vcmask 1043459   ;;  %vm946_vm6 = vcmask 1044484  }
  0xa6   : > { %2195 = vmatprep.subr.bf16.mxu0 %v2367_v2  ;;  %v603_v8 = vpack.c.bf16 %v602_v7, %v602_v7  ;;  %2209 = vmatprep.mubr.bf16.mxu0 %v2376_v9  ;;  %v2374_v12 = vld [vmem:[#allocation7 + $0x30] sm:$0xff]   ;;  %v2375_v13 = vld [vmem:[#allocation7 + $0x38] sm:$0xff]   ;;  %v2382_v16 = vld [vmem:[%s2917_s2 + $0x30] sm:$0xff]   ;;  %v675_v24 = vunpack.c.0.s8 %v674_v22  ;;  %v2985_v36 = vsub.s32 0, %v2978_v25  ;;  %vm948_vm7 = vcmask 1045509   ;;  %s374_s10 = scalar_lea.vmem [#allocation11], %s2925_s9 }
  0xa7   : > { %v2950_v14 = vld [vmem:[%s2917_s2 + $0x8] sm:$0xff]   ;;  %v2960_v17 = vld [vmem:[%s2917_s2 + $0x18] sm:$0xff]   ;;  %v2963_v18 = vld [vmem:[%s2917_s2 + $0x20] sm:$0xff]   ;;  %vm950_vm8 = vcmask 1046534   ;;  %vm952_vm9 = vcmask 1047559   ;;  %vm955_vm10 = vcmask 130048  }
  0xa8   : > { %2228 = vmatpush3.bf16.msra.mxu1 %v2372_v5  ;;  %v2968_v19 = vld [vmem:[%s2917_s2 + $0x28] sm:$0xff]   ;;  %v2972_v20 = vld [vmem:[%s2917_s2 + $0x38] sm:$0xff]   ;;  %v2137_v26 = vld [vmem:[%s3447_s4] ss:$0 sm:$0xff]  ;;  %v678_v30 = vsub.s32 %v675_v24, %v2978_v25  ;;  %s2152_s18 = sshll.u32 %s2719_s28, 7  ;;  %s1959_s21 = sshll.u32 %s374_s10, 4  ;;  %s1960_s21 = int_to_ptr.vmem [resolvable:$true] %s1959_s21 }
  0xa9   : > { %2196 = vmatpush3.bf16.msra.mxu0 %v2367_v2  ;;  %2233 = vmatprep.subr.bf16.mxu1 %v2652_v0  ;;  %v2992_v46 = vld [vmem:[%s3448_s5] ss:$0 sm:$0xff]  ;;  %s3366_s23 = scalar_lea.hbm %s3450_s7, %s2152_s18  ;;  %s1933_s22 = scalar_lea.sflag [#allocation12], %s2913_s26 }
  0xaa   : > { %2197 = vmatprep.subr.bf16.mxu0 %v2368_v3  ;;  %s2534_s14 = scalar_lea.vmem %s1960_s21, 128  ;;  %p3482_p13 = scmp.ne.s32.totalorder %s3469_s16, 0 }
  0xab   : > { %2230 = vmatmul.mubr.msk.bf16.vlgmr.msra.gmra.mrb[0].mxu1 %vm627_vm1, %v603_v8  ;;  %p2535_p1 = scmp.ne.s32.totalorder %s1960_s21, %s2534_s14  ;;  %s2656_s15 = smov [#allocation11]  }
  0xac   : > { %2234 = vmatpush3.bf16.msra.mxu1 %v2376_v9  ;;  %2235 = vmatprep.mubr.msk.bf16.mxu1 %vm2653_vm0, %v2652_v0  ;;  %s2538_s2 = sshll.u32 %s2656_s15, 4  ;;  %s2539_s2 = int_to_ptr.vmem [resolvable:$false] %s2538_s2 }
  0xad   : > { %2198 = vmatpush3.bf16.msra.mxu0 %v2368_v3  ;;  %2239 = vmatprep.subr.bf16.mxu1 %v2652_v0  ;;  %p2536_p6 = pnand %p2535_p1, %p3482_p13  ;;  %s2540_s0 = scalar_lea.vmem %s2539_s2, 256 }
  0xae   : > { %2199 = vmatprep.subr.bf16.mxu0 %v2369_v6  ;;  %p2541_p4 = scmp.lt.s32.totalorder %s1960_s21, %s2539_s2  ;;  %p2542_p5 = scmp.lt.s32.totalorder %s2540_s0, %s2534_s14 }
  0xaf   : > { %p2537_p10 = pneg %p2536_p6 }
  0xb0   : > { %p2543_p3 = por %p2542_p5, %p2541_p4 }
  0xb1   : > { %2200 = vmatpush3.bf16.msra.mxu0 %v2369_v6 }
  0xb2   : > { %2201 = vmatprep.subr.bf16.mxu0 %v2371_v10  ;;  %p2544_p7 = pnand %p2543_p3, %p2537_p10 }
  0xb5   : > { %2202 = vmatpush3.bf16.msra.mxu0 %v2371_v10 }
  0xb6   : > { %2203 = vmatprep.subr.bf16.mxu0 %v2373_v11 }
  0xb9   : > { %2204 = vmatpush3.bf16.msra.mxu0 %v2373_v11 }
  0xba   : > { %2205 = vmatprep.subr.bf16.mxu0 %v2374_v12 }
  0xbd   : > { %2206 = vmatpush3.bf16.msra.mxu0 %v2374_v12 }
  0xbe   : > { %2207 = vmatprep.subr.bf16.mxu0 %v2375_v13 }
  0xc1   : > { %2208 = vmatpush3.bf16.msra.mxu0 %v2375_v13 }
  0xc2   : > { %2269 = vmatprep.subr.bf16.mxu0 %v2652_v0 }
  0xc4   : > { %2210 = vmatmul.mubr.bf16.vlgmr.msra.gmra.mrb[0].mxu0 %v2950_v14 }
  0xc5   : > { %2213 = vmatprep.mubr.bf16.mxu0 %v2953_v15  ;;  %2270 = vmatpush3.bf16.msra.mxu0 %v2382_v16 }
  0xcc   : > { %2214 = vmatmul.mubr.bf16.gmra.mrb[4].mxu0 %v2960_v17 }
  0xcd   : > { %2217 = vmatprep.mubr.bf16.mxu0 %v2963_v18 }
  0xd4   : > { %2218 = vmatmul.mubr.bf16.gmra.mrb[8].mxu0 %v2968_v19 }
  0xd5   : > { %2221 = vmatprep.mubr.bf16.mxu0 %v2382_v16 }
  0xdc   : > { %2222 = vmatmul.mubr.bf16.gmra.mrb[12].mxu0 %v2972_v20 }
  0xdd   : > { %2271 = vmatprep.mubr.msk.bf16.mxu0 %vm2653_vm0, %v2652_v0 }
 0x17e   : > { %v665_v27 = vpop.f32.mrb[0].mxu1 }
 0x17f   : > { %v2231_v28 = vpop.f32.mrb[1].mxu1  ;;  %v666_v29 = vadd.f32 %v2137_v26, %v665_v27 }
 0x180   : > { %v668_v31 = vpop.f32.mrb[2].mxu1 }
 0x181   : > { %v2232_v32 = vpop.f32.mrb[3].mxu1  ;;  %v679_v33 = vrot.slane %v666_v29, %v678_v30  ;;  %v672_v40 = vcombine.high %v666_v29, %v666_v29 }
 0x183   : > { %v687_v34 = vcombine.high %v679_v33, %v679_v33  ;;  %v695_v37 = vrot.slane %v679_v33, %v678_v30  ;;  %v686_v47 = vrot.slane %v672_v40, %v678_v30 }
 0x185   : > { %v709_v35 = vrot.slane %v687_v34, %v678_v30  ;;  %v724_v39 = vrot.slane %v695_v37, %v2985_v36  ;;  %v717_v54 = vcombine.high %v695_v37, %v695_v37  ;;  %v688_v60 = vcombine.high %v686_v47, %v686_v47 }
 0x186   : > { %v702_v11 = vrot.slane %v686_v47, %v678_v30 }
 0x187   : > { %v728_v38 = vrot.slane %v709_v35, %v2985_v36  ;;  %v719_v51 = vcombine.high %v709_v35, %v709_v35  ;;  %v732_v62 = vrot.slane %v717_v54, %v2985_v36  ;;  %v716_v9 = vrot.slane %v688_v60, %v678_v30 }
 0x188   : > { %v740_v27 = vrot.slane %v702_v11, %v2985_v36  ;;  %v718_v40 = vcombine.high %v702_v11, %v702_v11 }
 0x189   : > { %v736_v59 = vrot.slane %v719_v51, %v2985_v36  ;;  %v744_v22 = vrot.slane %v716_v9, %v2985_v36 }
 0x197   : > { %v2211_v41 = vpop.f32.mrb[0].mxu0 }
 0x198   : > { %v763_v42 = vadd.f32 %v2211_v41, %v728_v38  ;;  %v539_v43 = vpop.f32.mrb[1].mxu0 }
 0x199   : > { %v761_v44 = vadd.f32 %v724_v39, %v539_v43  ;;  %v2212_v45 = vpop.f32.mrb[2].mxu0 }
 0x19a   : > { %v779_v48 = vmax.f32 %v763_v42, 0.0  ;;  %v764_v49 = vadd.f32 %v2212_v45, %v728_v38  ;;  %v542_v50 = vpop.f32.mrb[3].mxu0  ;;  %v720_v38 = vcombine.high %v716_v9, %v716_v9 }
 0x19b   : > { %v777_v52 = vmax.f32 %v761_v44, 0.0  ;;  %v762_v53 = vadd.f32 %v724_v39, %v542_v50 }
 0x19c   : > { %v780_v55 = vmax.f32 %v764_v49, 0.0  ;;  %v802_v56 = vmul.f32 %v2992_v46, %v779_v48  ;;  %v752_v45 = vrot.slane %v720_v38, %v2985_v36  ;;  %v748_v49 = vrot.slane %v718_v40, %v2985_v36 }
 0x19d   : > { %v778_v57 = vmax.f32 %v762_v53, 0.0  ;;  %v800_v58 = vmul.f32 %v2992_v46, %v777_v52 }
 0x19e   : > { %820 = vadd.xlane.f32.xlu1 %v802_v56  ;;  %v803_v2 = vmul.f32 %v2992_v46, %v780_v55 }
 0x19f   : > { %816 = vadd.xlane.f32.xlu0 %v800_v58  ;;  %v2215_v61 = vpop.f32.mrb[4].mxu0  ;;  %v801_v5 = vmul.f32 %v2992_v46, %v778_v57 }
 0x1a0   : > { %v767_v63 = vadd.f32 %v2215_v61, %v736_v59  ;;  %v555_v1 = vpop.f32.mrb[5].mxu0 }
 0x1a1   : > { %v765_v3 = vadd.f32 %v732_v62, %v555_v1  ;;  %v2216_v4 = vpop.f32.mrb[6].mxu0 }
 0x1a2   : > { %v783_v6 = vmax.f32 %v767_v63, 0.0  ;;  %v768_v7 = vadd.f32 %v2216_v4, %v736_v59  ;;  %822 = vadd.xlane.f32.xlu1 %v803_v2  ;;  %v558_v8 = vpop.f32.mrb[7].mxu0 }
 0x1a3   : > { %v766_v10 = vadd.f32 %v732_v62, %v558_v8  ;;  %818 = vadd.xlane.f32.xlu0 %v801_v5  ;;  %v781_v16 = vmax.f32 %v765_v3, 0.0  ;;  %v865_v8 = vand.u32 127, %v676_v23 }
 0x1a4   : > { %v784_v12 = vmax.f32 %v768_v7, 0.0  ;;  %v806_v13 = vmul.f32 %v2992_v46, %v783_v6 }
 0x1a5   : > { %v782_v21 = vmax.f32 %v766_v10, 0.0  ;;  %v804_v30 = vmul.f32 %v2992_v46, %v781_v16  ;;  %v870_v10 = vadd.s32 4294967288, %v865_v8  ;;  %v3037_v16 = vsub.s32 %v865_v8, %v2978_v25 }
 0x1a6   : > { %v807_v24 = vmul.f32 %v2992_v46, %v784_v12 }
 0x1a7   : > { %828 = vadd.xlane.f32.xlu0 %v806_v13  ;;  %v2219_v26 = vpop.f32.mrb[8].mxu0  ;;  %v805_v37 = vmul.f32 %v2992_v46, %v782_v21 }
 0x1a8   : > { %v771_v28 = vadd.f32 %v2219_v26, %v744_v22  ;;  %830 = vadd.xlane.f32.xlu1 %v807_v24  ;;  %v571_v29 = vpop.f32.mrb[9].mxu0 }
 0x1a9   : > { %v769_v31 = vadd.f32 %v740_v27, %v571_v29  ;;  %v2220_v32 = vpop.f32.mrb[10].mxu0 }
 0x1aa   : > { %v787_v33 = vmax.f32 %v771_v28, 0.0  ;;  %v772_v34 = vadd.f32 %v2220_v32, %v744_v22  ;;  %v574_v35 = vpop.f32.mrb[11].mxu0 }
 0x1ab   : > { %v770_v39 = vadd.f32 %v740_v27, %v574_v35  ;;  %824 = vadd.xlane.f32.xlu0 %v804_v30  ;;  %v785_v43 = vmax.f32 %v769_v31, 0.0 }
 0x1ac   : > { %v788_v41 = vmax.f32 %v772_v34, 0.0  ;;  %826 = vadd.xlane.f32.xlu1 %v805_v37  ;;  %v810_v42 = vmul.f32 %v2992_v46, %v787_v33 }
 0x1ad   : > { %v786_v44 = vmax.f32 %v770_v39, 0.0  ;;  %v808_v54 = vmul.f32 %v2992_v46, %v785_v43 }
 0x1ae   : > { %v811_v47 = vmul.f32 %v2992_v46, %v788_v41 }
 0x1af   : > { %836 = vadd.xlane.f32.xlu0 %v810_v42  ;;  %v2223_v48 = vpop.f32.mrb[12].mxu0  ;;  %v809_v57 = vmul.f32 %v2992_v46, %v786_v44 }
 0x1b0   : > { %v775_v50 = vadd.f32 %v2223_v48, %v752_v45  ;;  %838 = vadd.xlane.f32.xlu1 %v811_v47  ;;  %v587_v51 = vpop.f32.mrb[13].mxu0 }
 0x1b1   : > { %v773_v52 = vadd.f32 %v748_v49, %v587_v51  ;;  %v2224_v53 = vpop.f32.mrb[14].mxu0 }
 0x1b2   : > { %v776_v55 = vadd.f32 %v2224_v53, %v752_v45  ;;  %v590_v56 = vpop.f32.mrb[15].mxu0  ;;  %v791_v60 = vmax.f32 %v775_v50, 0.0 }
 0x1b3   : > { %v789_v58 = vmax.f32 %v773_v52, 0.0  ;;  %v774_v59 = vadd.f32 %v748_v49, %v590_v56  ;;  %832 = vadd.xlane.f32.xlu0 %v808_v54 }
 0x1b4   : > { %834 = vadd.xlane.f32.xlu1 %v809_v57  ;;  %v792_v63 = vmax.f32 %v776_v55, 0.0  ;;  %v814_v2 = vmul.f32 %v2992_v46, %v791_v60 }
 0x1b5   : > { %v790_v61 = vmax.f32 %v774_v59, 0.0  ;;  %v812_v62 = vmul.f32 %v2992_v46, %v789_v58 }
 0x1b6   : > { %v815_v3 = vmul.f32 %v2992_v46, %v792_v63 }
 0x1b7   : > { %840 = vadd.xlane.f32.xlu0 %v812_v62  ;;  %v813_v1 = vmul.f32 %v2992_v46, %v790_v61  ;;  %v3032_v46 = vsub.s32 %v870_v10, %v2978_v25 }
 0x1b9   : > { %842 = vadd.xlane.f32.xlu1 %v813_v1  ;;  %v2655_v1 = vmov 0  }
 0x1ba   : > { %2365 = vset.pattern.permute.xlu0 %v2655_v1  ;;  %2364 = vset.pattern.permute.xlu1 %v2655_v1 }
 0x1bb   : > { %844 = vadd.xlane.f32.xlu0 %v814_v2  ;;  %v966_v2 = vsub.s32 1, %v2978_v25 }
 0x1bd   : > { %846 = vadd.xlane.f32.xlu1 %v815_v3 }
 0x22b   : > { %v3016_v4 = vpop.xlane.xlu1 %820 }
 0x22c   : > { %v3018_v5 = vpop.xlane.xlu0 %816  ;;  %v880_v28 = vrot.slane %v3016_v4, %v3037_v16 }
 0x22d   : > { %v869_v29 = vrot.slane %v3018_v5, %v3037_v16 }
 0x22f   : > { %v3022_v7 = vpop.xlane.xlu1 %822 }
 0x230   : > { %v3020_v6 = vpop.xlane.xlu0 %818  ;;  %v884_v23 = vrot.slane %v3022_v7, %v3032_v46 }
 0x231   : > { %v874_v22 = vrot.slane %v3020_v6, %v3032_v46 }
 0x232   : > { %v885_v32 = vsel %vm875_vm2, %v884_v23, %v880_v28  ;;  %v982_v23 = vsub.s32 5, %v2978_v25 }
 0x233   : > { %v876_v30 = vsel %vm875_vm2, %v874_v22, %v869_v29  ;;  %v986_v29 = vsub.s32 6, %v2978_v25 }
 0x234   : > { %v3025_v9 = vpop.xlane.xlu0 %828  ;;  %v941_v40 = vsel %vm940_vm3, %v885_v32, %v876_v30 }
 0x235   : > { %v3027_v11 = vpop.xlane.xlu1 %830  ;;  %v898_v38 = vrot.slane %v3025_v9, %v3037_v16 }
 0x236   : > { %v902_v39 = vrot.slane %v3027_v11, %v3032_v46 }
 0x238   : > { %v3029_v12 = vpop.xlane.xlu0 %824  ;;  %v903_v45 = vsel %vm875_vm2, %v902_v39, %v898_v38  ;;  %v974_v39 = vsub.s32 3, %v2978_v25 }
 0x239   : > { %v3034_v13 = vpop.xlane.xlu1 %826  ;;  %v889_v26 = vrot.slane %v3029_v12, %v3037_v16 }
 0x23a   : > { %v893_v27 = vrot.slane %v3034_v13, %v3032_v46 }
 0x23c   : > { %v3039_v21 = vpop.xlane.xlu0 %836  ;;  %v894_v34 = vsel %vm875_vm2, %v893_v27, %v889_v26  ;;  %v970_v27 = vsub.s32 2, %v2978_v25 }
 0x23d   : > { %v3045_v24 = vpop.xlane.xlu1 %838  ;;  %v943_v42 = vsel %vm942_vm4, %v894_v34, %v941_v40  ;;  %v916_v47 = vrot.slane %v3039_v21, %v3037_v16 }
 0x23e   : > { %v920_v48 = vrot.slane %v3045_v24, %v3032_v46  ;;  %v945_v52 = vsel %vm944_vm5, %v903_v45, %v943_v42 }
 0x240   : > { %v3055_v31 = vpop.xlane.xlu0 %832  ;;  %v921_v56 = vsel %vm875_vm2, %v920_v48, %v916_v47 }
 0x241   : > { %v3059_v33 = vpop.xlane.xlu1 %834  ;;  %v907_v35 = vrot.slane %v3055_v31, %v3037_v16 }
 0x242   : > { %v911_v37 = vrot.slane %v3059_v33, %v3032_v46 }
 0x244   : > { %v3071_v41 = vpop.xlane.xlu0 %840  ;;  %v912_v43 = vsel %vm875_vm2, %v911_v37, %v907_v35 }
 0x245   : > { %v925_v50 = vrot.slane %v3071_v41, %v3037_v16  ;;  %v947_v53 = vsel %vm946_vm6, %v912_v43, %v945_v52 }
 0x246   : > { %v3075_v44 = vpop.xlane.xlu1 %842  ;;  %v949_v59 = vsel %vm948_vm7, %v921_v56, %v947_v53 }
 0x247   : > { %v929_v49 = vrot.slane %v3075_v44, %v3032_v46 }
 0x248   : > { %v3086_v51 = vpop.xlane.xlu0 %844 }
 0x249   : > { %v930_v55 = vsel %vm875_vm2, %v929_v49, %v925_v50  ;;  %v934_v57 = vrot.slane %v3086_v51, %v3037_v16 }
 0x24a   : > { %v3090_v54 = vpop.xlane.xlu1 %846  ;;  %v951_v61 = vsel %vm950_vm8, %v930_v55, %v949_v59 }
 0x24b   : > { %v938_v58 = vrot.slane %v3090_v54, %v3032_v46 }
 0x24d   : > { %v939_v60 = vsel %vm875_vm2, %v938_v58, %v934_v57 }
 0x24e   : > { %v953_v62 = vsel %vm952_vm9, %v939_v60, %v951_v61 }
 0x24f   : > { %v956_v63 = vsel %vm955_vm10, %v953_v62, -inf }
 0x250   : > { %957 = vmax.xlane.f32.xlu0 %v956_v63 }
 0x2dd   : > { %v958_v3 = vpop.xlane.xlu0 %957 }
 0x2de   : > { %v963_v8 = vrot.slane %v958_v3, %v2985_v36  ;;  %v967_v10 = vrot.slane %v958_v3, %v966_v2  ;;  %v3115_v32 = vrot.slane %v958_v3, %v982_v23  ;;  %v971_v35 = vrot.slane %v958_v3, %v970_v27 }
 0x2df   : > { %v975_v47 = vrot.slane %v958_v3, %v974_v39 }
 0x2e0   : > { %v1000_v22 = vsub.f32 %v3018_v5, %v963_v8  ;;  %v1001_v26 = vsub.f32 %v3020_v6, %v963_v8  ;;  %v1002_v28 = vsub.f32 %v3016_v4, %v967_v10  ;;  %v1003_v37 = vsub.f32 %v3022_v7, %v967_v10 }
 0x2e1   : > { %v990_v6 = vsub.s32 7, %v2978_v25  ;;  %v3123_v4 = vrot.slane %v958_v3, %v986_v29  ;;  %v1010_v38 = vsub.f32 %v3039_v21, %v3115_v32  ;;  %v1004_v40 = vsub.f32 %v3029_v12, %v971_v35 }
 0x2e2   : > { %v1016_v30 = vmul.f32 1.442695, %v1000_v22  ;;  %v1018_v34 = vmul.f32 1.442695, %v1001_v26  ;;  %v1020_v5 = vmul.f32 1.442695, %v1002_v28  ;;  %v1005_v48 = vsub.f32 %v3034_v13, %v971_v35 }
 0x2e3   : > { %v1022_v42 = vmul.f32 1.442695, %v1003_v37  ;;  %v991_v7 = vrot.slane %v958_v3, %v990_v6  ;;  %v1012_v43 = vsub.f32 %v3071_v41, %v3123_v4  ;;  %v1036_v45 = vmul.f32 1.442695, %v1010_v38 }
 0x2e4   : > { %2384 = vpow2.f32 %v1016_v30  ;;  %v1024_v21 = vmul.f32 1.442695, %v1004_v40  ;;  %v978_v41 = vsub.s32 4, %v2978_v25  ;;  %v1006_v53 = vsub.f32 %v3025_v9, %v975_v47 }
 0x2e5   : > { %2386 = vpow2.f32 %v1018_v34  ;;  %v1014_v12 = vsub.f32 %v3086_v51, %v991_v7  ;;  %v1040_v50 = vmul.f32 1.442695, %v1012_v43  ;;  %v1026_v55 = vmul.f32 1.442695, %v1005_v48 }
 0x2e6   : > { %2388 = vpow2.f32 %v1020_v5  ;;  %v979_v51 = vrot.slane %v958_v3, %v978_v41  ;;  %v1007_v57 = vsub.f32 %v3027_v11, %v975_v47  ;;  %v1028_v58 = vmul.f32 1.442695, %v1006_v53 }
 0x2e7   : > { %2390 = vpow2.f32 %v1022_v42  ;;  %v1044_v56 = vmul.f32 1.442695, %v1014_v12  ;;  %v1011_v8 = vsub.f32 %v3045_v24, %v3115_v32  ;;  %v1015_v30 = vsub.f32 %v3090_v54, %v991_v7 }
 0x2e8   : > { %2392 = vpow2.f32 %v1036_v45  ;;  %v1008_v60 = vsub.f32 %v3055_v31, %v979_v51  ;;  %v1030_v61 = vmul.f32 1.442695, %v1007_v57  ;;  %v1009_v63 = vsub.f32 %v3059_v33, %v979_v51 }
 0x2e9   : > { %2394 = vpow2.f32 %v1024_v21  ;;  %v1013_v33 = vsub.f32 %v3075_v44, %v3123_v4  ;;  %v1038_v26 = vmul.f32 1.442695, %v1011_v8  ;;  %v1046_v34 = vmul.f32 1.442695, %v1015_v30 }
 0x2ea   : > { %2396 = vpow2.f32 %v1040_v50  ;;  %v1032_v1 = vmul.f32 1.442695, %v1008_v60  ;;  %v1034_v10 = vmul.f32 1.442695, %v1009_v63 }
 0x2eb   : > { %2398 = vpow2.f32 %v1026_v55  ;;  %v1042_v24 = vmul.f32 1.442695, %v1013_v33 }
 0x2ec   : > { %2400 = vpow2.f32 %v1044_v56 }
 0x2ed   : > { %2402 = vpow2.f32 %v1028_v58 }
 0x2ee   : > { %v3136_v49 = vpop.eup %2384  ;;  %2404 = vpow2.f32 %v1030_v61 }
 0x2ef   : > { %v3139_v52 = vpop.eup %2386  ;;  %1065 = vperm.xlu1 %2364, %v3136_v49   ;;  %2406 = vpow2.f32 %v1032_v1 }
 0x2f0   : > { %1068 = vperm.xlu0 %2365, %v3139_v52   ;;  %v3145_v13 = vpop.eup %2388  ;;  %2408 = vpow2.f32 %v1034_v10 }
 0x2f1   : > { %v3151_v59 = vpop.eup %2390  ;;  %2410 = vpow2.f32 %v1038_v26 }
 0x2f2   : > { %v3154_v9 = vpop.eup %2392  ;;  %2412 = vpow2.f32 %v1042_v24 }
 0x2f3   : > { %1071 = vperm.xlu1 %2364, %v3145_v13   ;;  %v3158_v62 = vpop.eup %2394  ;;  %2414 = vpow2.f32 %v1046_v34 }
 0x2f4   : > { %1095 = vperm.xlu0 %2365, %v3154_v9   ;;  %v3161_v11 = vpop.eup %2396 }
 0x2f5   : > { %v3165_v3 = vpop.eup %2398 }
 0x2f6   : > { %v3168_v31 = vpop.eup %2400 }
 0x2f7   : > { %1074 = vperm.xlu1 %2364, %v3151_v59   ;;  %v3173_v22 = vpop.eup %2402 }
 0x2f8   : > { %1101 = vperm.xlu0 %2365, %v3161_v11   ;;  %v3178_v28 = vpop.eup %2404 }
 0x2f9   : > { %v3182_v32 = vpop.eup %2406 }
 0x2fa   : > { %v3185_v35 = vpop.eup %2408 }
 0x2fb   : > { %1077 = vperm.xlu1 %2364, %v3158_v62   ;;  %v3188_v44 = vpop.eup %2410 }
 0x2fc   : > { %1107 = vperm.xlu0 %2365, %v3168_v31   ;;  %v3191_v37 = vpop.eup %2412 }
 0x2fd   : > { %v3194_v54 = vpop.eup %2414 }
 0x2ff   : > { %1080 = vperm.xlu1 %2364, %v3165_v3  }
 0x303   : > { %1083 = vperm.xlu1 %2364, %v3173_v22  }
 0x307   : > { %1086 = vperm.xlu1 %2364, %v3178_v28  }
 0x30b   : > { %1089 = vperm.xlu1 %2364, %v3182_v32  }
 0x30f   : > { %1092 = vperm.xlu1 %2364, %v3185_v35  }
 0x313   : > { %1098 = vperm.xlu1 %2364, %v3188_v44  }
 0x317   : > { %1104 = vperm.xlu1 %2364, %v3191_v37  }
 0x31b   : > { %1110 = vperm.xlu1 %2364, %v3194_v54  }
 0x36e   : > { %v1066_v5 = vpop.permute.xlu1 %1065 }
 0x36f   : > { %v1069_v43 = vpop.permute.xlu0 %1068  ;;  %v1115_v51 = vrot.slane %v1066_v5, %v3037_v16 }
 0x370   : > { %v1119_v56 = vrot.slane %v1069_v43, %v3032_v46 }
 0x372   : > { %v1072_v4 = vpop.permute.xlu1 %1071  ;;  %v1120_v30 = vsel %vm875_vm2, %v1119_v56, %v1115_v51 }
 0x373   : > { %v1096_v48 = vpop.permute.xlu0 %1095  ;;  %v1124_v57 = vrot.slane %v1072_v4, %v3037_v16 }
 0x374   : > { %v1160_v24 = vrot.slane %v1096_v48, %v3037_v16 }
 0x376   : > { %v1075_v38 = vpop.permute.xlu1 %1074 }
 0x377   : > { %v1128_v12 = vrot.slane %v1075_v38, %v3032_v46  ;;  %v1102_v50 = vpop.permute.xlu0 %1101 }
 0x378   : > { %v1169_v4 = vrot.slane %v1102_v50, %v3037_v16 }
 0x379   : > { %v1129_v63 = vsel %vm875_vm2, %v1128_v12, %v1124_v57 }
 0x37a   : > { %v1078_v40 = vpop.permute.xlu1 %1077  ;;  %v1184_v38 = vsel %vm940_vm3, %v1129_v63, %v1120_v30 }
 0x37b   : > { %v1133_v60 = vrot.slane %v1078_v40, %v3037_v16  ;;  %v1108_v40 = vpop.permute.xlu0 %1107 }
 0x37e   : > { %v1081_v42 = vpop.permute.xlu1 %1080 }
 0x37f   : > { %v1137_v53 = vrot.slane %v1081_v42, %v3032_v46 }
 0x381   : > { %v1138_v10 = vsel %vm875_vm2, %v1137_v53, %v1133_v60 }
 0x382   : > { %v1084_v7 = vpop.permute.xlu1 %1083 }
 0x383   : > { %v1142_v1 = vrot.slane %v1084_v7, %v3037_v16  ;;  %v1185_v7 = vsel %vm942_vm4, %v1138_v10, %v1184_v38 }
 0x386   : > { %v1087_v45 = vpop.permute.xlu1 %1086 }
 0x387   : > { %v1146_v58 = vrot.slane %v1087_v45, %v3032_v46 }
 0x389   : > { %v1147_v34 = vsel %vm875_vm2, %v1146_v58, %v1142_v1 }
 0x38a   : > { %v1090_v47 = vpop.permute.xlu1 %1089  ;;  %v1186_v45 = vsel %vm944_vm5, %v1147_v34, %v1185_v7 }
 0x38b   : > { %v1151_v33 = vrot.slane %v1090_v47, %v3037_v16 }
 0x38e   : > { %v1093_v21 = vpop.permute.xlu1 %1092 }
 0x38f   : > { %v1155_v61 = vrot.slane %v1093_v21, %v3032_v46  ;;  %v1178_v21 = vrot.slane %v1108_v40, %v3037_v16 }
 0x391   : > { %v1156_v42 = vsel %vm875_vm2, %v1155_v61, %v1151_v33 }
 0x392   : > { %v1099_v55 = vpop.permute.xlu1 %1098  ;;  %v1187_v12 = vsel %vm946_vm6, %v1156_v42, %v1186_v45 }
 0x393   : > { %v1164_v8 = vrot.slane %v1099_v55, %v3032_v46 }
 0x395   : > { %v1165_v43 = vsel %vm875_vm2, %v1164_v8, %v1160_v24 }
 0x396   : > { %v1105_v26 = vpop.permute.xlu1 %1104  ;;  %v1188_v53 = vsel %vm948_vm7, %v1165_v43, %v1187_v12 }
 0x397   : > { %v1173_v5 = vrot.slane %v1105_v26, %v3032_v46 }
 0x399   : > { %v1174_v47 = vsel %vm875_vm2, %v1173_v5, %v1169_v4 }
 0x39a   : > { %v1111_v48 = vpop.permute.xlu1 %1110  ;;  %v1189_v56 = vsel %vm950_vm8, %v1174_v47, %v1188_v53 }
 0x39b   : > { %v1182_v50 = vrot.slane %v1111_v48, %v3032_v46 }
 0x39d   : > { %v1183_v55 = vsel %vm875_vm2, %v1182_v50, %v1178_v21 }
 0x39e   : > { %v1190_v51 = vsel %vm952_vm9, %v1183_v55, %v1189_v56 }
 0x39f   : > { %v1192_v57 = vsel %vm955_vm10, %v1190_v51, 0.0 }
 0x3a0   : > { %1193 = vadd.xlane.f32.xlu0 %v1192_v57 }
 0x42d   : > { %v1194_v58 = vpop.xlane.xlu0 %1193 }
 0x42e   : > { %2416 = vrcp.f32 %v1194_v58 }
 0x438   : > { %v2417_v60 = vpop.eup %2416 }
 0x439   : > { %v1217_v61 = vrot.slane %v2417_v60, %v978_v41  ;;  %v1201_v63 = vrot.slane %v2417_v60, %v2985_v36  ;;  %v1229_v1 = vrot.slane %v2417_v60, %v990_v6  ;;  %v1205_v8 = vrot.slane %v2417_v60, %v966_v2 }
 0x43a   : > { %v1221_v47 = vrot.slane %v2417_v60, %v982_v23 }
 0x43b   : > { %v1246_v10 = vmul.f32 %v3182_v32, %v1217_v61  ;;  %v3238_v33 = vmul.f32 %v3185_v35, %v1217_v61  ;;  %v1238_v26 = vmul.f32 %v3136_v49, %v1201_v63  ;;  %v3242_v30 = vmul.f32 %v3139_v52, %v1201_v63 }
 0x43c   : > { %v1252_v41 = vmul.f32 %v3168_v31, %v1229_v1  ;;  %v3246_v36 = vmul.f32 %v3194_v54, %v1229_v1  ;;  %v1240_v2 = vmul.f32 %v3145_v13, %v1205_v8  ;;  %v1241_v49 = vmul.f32 %v3151_v59, %v1205_v8 }
 0x43d   : > { %v1403_v6 = vpack.c.bf16 %v3238_v33, %v1246_v10  ;;  %v1399_v24 = vpack.c.bf16 %v3242_v30, %v1238_v26  ;;  %v1209_v54 = vrot.slane %v2417_v60, %v970_v27  ;;  %v1213_v59 = vrot.slane %v2417_v60, %v974_v39 }
 0x43e   : > { %v1406_v35 = vpack.c.bf16 %v3246_v36, %v1252_v41  ;;  %v1400_v31 = vpack.c.bf16 %v1241_v49, %v1240_v2  ;;  %v1248_v39 = vmul.f32 %v3154_v9, %v1221_v47 }
 0x43f   : > { %v1656_v32 = vunpack.c.l.b16 %v1403_v6  ;;  %v1408_v34 = vunpack.c.l.b16 %v1399_v24  ;;  %v1409_v5 = vunpack.c.h.b16 %v1399_v24  ;;  %v1242_v38 = vmul.f32 %v3158_v62, %v1209_v54 }
 0x440   : > { %v1842_v52 = vunpack.c.l.b16 %v1406_v35  ;;  %v1470_v4 = vunpack.c.l.b16 %v1400_v31  ;;  %v1243_v13 = vmul.f32 %v3165_v3, %v1209_v54  ;;  %v1471_v40 = vunpack.c.h.b16 %v1400_v31 }
 0x441   : > { %1659 = vperm.xlu0 %2365, %v1656_v32   ;;  %1411 = vperm.xlu1 %2364, %v1408_v34   ;;  %v1244_v43 = vmul.f32 %v3173_v22, %v1213_v59  ;;  %v1245_v27 = vmul.f32 %v3178_v28, %v1213_v59  ;;  %v1225_v22 = vrot.slane %v2417_v60, %v986_v29  ;;  %v1657_v12 = vunpack.c.h.b16 %v1403_v6 }
 0x442   : > { %v1401_v42 = vpack.c.bf16 %v1243_v13, %v1242_v38  ;;  %v1249_v28 = vmul.f32 %v3188_v44, %v1221_v47  ;;  %v1843_v44 = vunpack.c.h.b16 %v1406_v35 }
 0x443   : > { %v1402_v62 = vpack.c.bf16 %v1245_v27, %v1244_v43  ;;  %v1250_v21 = vmul.f32 %v3161_v11, %v1225_v22  ;;  %v1251_v23 = vmul.f32 %v3191_v37, %v1225_v22 }
 0x444   : > { %v1532_v7 = vunpack.c.l.b16 %v1401_v42  ;;  %v1533_v45 = vunpack.c.h.b16 %v1401_v42  ;;  %v1404_v50 = vpack.c.bf16 %v1249_v28, %v1248_v39 }
 0x445   : > { %1845 = vperm.xlu0 %2365, %v1842_v52   ;;  %1414 = vperm.xlu1 %2364, %v1409_v5   ;;  %v1594_v3 = vunpack.c.l.b16 %v1402_v62  ;;  %v1595_v48 = vunpack.c.h.b16 %v1402_v62  ;;  %v1405_v55 = vpack.c.bf16 %v1251_v23, %v1250_v21 }
 0x446   : > { %v1718_v53 = vunpack.c.l.b16 %v1404_v50  ;;  %v1719_v9 = vunpack.c.h.b16 %v1404_v50 }
 0x447   : > { %v1780_v25 = vunpack.c.l.b16 %v1405_v55  ;;  %v1781_v29 = vunpack.c.h.b16 %v1405_v55 }
 0x449   : > { %1271 = vperm.xlu0 %2365, %v1238_v26   ;;  %1473 = vperm.xlu1 %2364, %v1470_v4  }
 0x44d   : > { %1277 = vperm.xlu0 %2365, %v1240_v2   ;;  %1476 = vperm.xlu1 %2364, %v1471_v40  }
 0x451   : > { %1283 = vperm.xlu0 %2365, %v1242_v38   ;;  %1535 = vperm.xlu1 %2364, %v1532_v7  }
 0x455   : > { %1289 = vperm.xlu0 %2365, %v1244_v43   ;;  %1538 = vperm.xlu1 %2364, %v1533_v45  }
 0x459   : > { %1295 = vperm.xlu0 %2365, %v1246_v10   ;;  %1597 = vperm.xlu1 %2364, %v1594_v3  }
 0x45d   : > { %1301 = vperm.xlu0 %2365, %v1248_v39   ;;  %1600 = vperm.xlu1 %2364, %v1595_v48  }
 0x461   : > { %1307 = vperm.xlu0 %2365, %v1250_v21   ;;  %1662 = vperm.xlu1 %2364, %v1657_v12  }
 0x465   : > { %1313 = vperm.xlu0 %2365, %v1252_v41   ;;  %1721 = vperm.xlu1 %2364, %v1718_v53  }
 0x469   : > { %1724 = vperm.xlu1 %2364, %v1719_v9  }
 0x46d   : > { %1783 = vperm.xlu1 %2364, %v1780_v25  }
 0x471   : > { %1786 = vperm.xlu1 %2364, %v1781_v29  }
 0x475   : > { %1848 = vperm.xlu1 %2364, %v1843_v44  }
 0x479   : > { %1274 = vperm.xlu1 %2364, %v3242_v30  }
 0x47d   : > { %1280 = vperm.xlu1 %2364, %v1241_v49  }
 0x481   : > { %1286 = vperm.xlu1 %2364, %v1243_v13  }
 0x485   : > { %1292 = vperm.xlu1 %2364, %v1245_v27  }
 0x489   : > { %1298 = vperm.xlu1 %2364, %v3238_v33  }
 0x48d   : > { %1304 = vperm.xlu1 %2364, %v1249_v28  }
 0x491   : > { %1310 = vperm.xlu1 %2364, %v1251_v23  }
 0x495   : > { %1316 = vperm.xlu1 %2364, %v3246_v36  }
 0x4c0   : > { %v1412_v11 = vpop.permute.xlu1 %1411 }
 0x4c1   : > { %v1419_v56 = vrot.slane %v1412_v11, %v3037_v16 }
 0x4c4   : > { %v1415_v37 = vpop.permute.xlu1 %1414 }
 0x4c5   : > { %v1423_v51 = vrot.slane %v1415_v37, %v3032_v46 }
 0x4c7   : > { %v1424_v57 = vsel %vm875_vm2, %v1423_v51, %v1419_v56 }
 0x4c8   : > { %v1425_v58 = vpack.c.b16 %v1424_v57, %v1424_v57  ;;  %v1474_v60 = vpop.permute.xlu1 %1473 }
 0x4c9   : > { %v1481_v63 = vrot.slane %v1474_v60, %v3037_v16 }
 0x4ca   : > { %2236 = vmatmul.mubr.msk.bf16.vlgmr.msra.gmra.mrb[4].mxu1 %vm955_vm10, %v1425_v58 }
 0x4cb   : > { %2240 = vmatpush3.bf16.msra.mxu1 %v2950_v14  ;;  %2241 = vmatprep.mubr.msk.bf16.mxu1 %vm2653_vm0, %v2652_v0 }
 0x4cc   : > { %v1477_v61 = vpop.permute.xlu1 %1476  ;;  %2245 = vmatprep.subr.bf16.mxu1 %v2652_v0 }
 0x4cd   : > { %v1485_v1 = vrot.slane %v1477_v61, %v3032_v46 }
 0x4cf   : > { %v1486_v8 = vsel %vm875_vm2, %v1485_v1, %v1481_v63 }
 0x4d0   : > { %v1487_v10 = vpack.c.b16 %v1486_v8, %v1486_v8  ;;  %v1536_v33 = vpop.permute.xlu1 %1535 }
 0x4d1   : > { %v1543_v26 = vrot.slane %v1536_v33, %v3037_v16 }
 0x4d2   : > { %2242 = vmatmul.mubr.msk.bf16.vlgmr.msra.gmra.mrb[8].mxu1 %vm955_vm10, %v1487_v10 }
 0x4d3   : > { %2246 = vmatpush3.bf16.msra.mxu1 %v2953_v15  ;;  %2247 = vmatprep.mubr.msk.bf16.mxu1 %vm2653_vm0, %v2652_v0  ;;  %v1660_v15 = vpop.permute.xlu0 %1659 }
 0x4d4   : > { %v1539_v14 = vpop.permute.xlu1 %1538  ;;  %2251 = vmatprep.subr.bf16.mxu1 %v2652_v0 }
 0x4d5   : > { %v1547_v30 = vrot.slane %v1539_v14, %v3032_v46 }
 0x4d7   : > { %v1548_v41 = vsel %vm875_vm2, %v1547_v30, %v1543_v26  ;;  %v1846_v5 = vpop.permute.xlu0 %1845 }
 0x4d8   : > { %v1549_v36 = vpack.c.b16 %v1548_v41, %v1548_v41  ;;  %v1598_v6 = vpop.permute.xlu1 %1597  ;;  %v1853_v48 = vrot.slane %v1846_v5, %v3037_v16 }
 0x4d9   : > { %v1605_v2 = vrot.slane %v1598_v6, %v3037_v16 }
 0x4da   : > { %2248 = vmatmul.mubr.msk.bf16.vlgmr.msra.gmra.mrb[12].mxu1 %vm955_vm10, %v1549_v36 }
 0x4db   : > { %2252 = vmatpush3.bf16.msra.mxu1 %v2960_v17  ;;  %2253 = vmatprep.mubr.msk.bf16.mxu1 %vm2653_vm0, %v2652_v0  ;;  %v1667_v17 = vrot.slane %v1660_v15, %v3037_v16  ;;  %v1272_v4 = vpop.permute.xlu0 %1271 }
 0x4dc   : > { %v1601_v24 = vpop.permute.xlu1 %1600  ;;  %2257 = vmatprep.subr.bf16.mxu1 %v2652_v0  ;;  %v1321_v60 = vrot.slane %v1272_v4, %v3037_v16 }
 0x4dd   : > { %v1609_v32 = vrot.slane %v1601_v24, %v3032_v46 }
 0x4df   : > { %v1610_v34 = vsel %vm875_vm2, %v1609_v32, %v1605_v2  ;;  %v1278_v7 = vpop.permute.xlu0 %1277 }
 0x4e0   : > { %v1611_v35 = vpack.c.b16 %v1610_v34, %v1610_v34  ;;  %v1663_v49 = vpop.permute.xlu1 %1662  ;;  %v1330_v37 = vrot.slane %v1278_v7, %v3037_v16 }
 0x4e1   : > { %v1671_v52 = vrot.slane %v1663_v49, %v3032_v46 }
 0x4e2   : > { %2254 = vmatmul.mubr.msk.bf16.vlgmr.msra.gmra.mrb[16].mxu1 %vm955_vm10, %v1611_v35 }
 0x4e3   : > { %2258 = vmatpush3.bf16.msra.mxu1 %v2963_v18  ;;  %2259 = vmatprep.mubr.msk.bf16.mxu1 %vm2653_vm0, %v2652_v0  ;;  %v1672_v54 = vsel %vm875_vm2, %v1671_v52, %v1667_v17 }
 0x4e4   : > { %v1722_v31 = vpop.permute.xlu1 %1721  ;;  %2263 = vmatprep.subr.bf16.mxu1 %v2652_v0  ;;  %v1673_v38 = vpack.c.b16 %v1672_v54, %v1672_v54 }
 0x4e5   : > { %v1729_v42 = vrot.slane %v1722_v31, %v3037_v16 }
 0x4e8   : > { %v1725_v13 = vpop.permute.xlu1 %1724 }
 0x4e9   : > { %v1733_v40 = vrot.slane %v1725_v13, %v3032_v46 }
 0x4ea   : > { %2260 = vmatmul.mubr.msk.bf16.vlgmr.msra.gmra.mrb[20].mxu1 %vm955_vm10, %v1673_v38 }
 0x4eb   : > { %2264 = vmatpush3.bf16.msra.mxu1 %v2968_v19  ;;  %2265 = vmatprep.mubr.msk.bf16.mxu1 %vm2653_vm0, %v2652_v0  ;;  %v1734_v59 = vsel %vm875_vm2, %v1733_v40, %v1729_v42  ;;  %v1284_v19 = vpop.permute.xlu0 %1283 }
 0x4ec   : > { %v1784_v18 = vpop.permute.xlu1 %1783  ;;  %2275 = vmatprep.subr.bf16.mxu1 %v2652_v0  ;;  %v1735_v43 = vpack.c.b16 %v1734_v59, %v1734_v59  ;;  %v1339_v57 = vrot.slane %v1284_v19, %v3037_v16 }
 0x4ed   : > { %v1791_v45 = vrot.slane %v1784_v18, %v3037_v16 }
 0x4ef   : > { %v1290_v50 = vpop.permute.xlu0 %1289 }
 0x4f0   : > { %v1787_v27 = vpop.permute.xlu1 %1786  ;;  %v1348_v61 = vrot.slane %v1290_v50, %v3037_v16 }
 0x4f1   : > { %v1795_v62 = vrot.slane %v1787_v27, %v3032_v46 }
 0x4f2   : > { %2266 = vmatmul.mubr.msk.bf16.vlgmr.msra.gmra.mrb[24].mxu1 %vm955_vm10, %v1735_v43 }
 0x4f3   : > { %v1796_v3 = vsel %vm875_vm2, %v1795_v62, %v1791_v45  ;;  %2276 = vmatpush3.bf16.msra.mxu1 %v2972_v20  ;;  %2277 = vmatprep.mubr.msk.bf16.mxu1 %vm2653_vm0, %v2652_v0  ;;  %v1296_v53 = vpop.permute.xlu0 %1295 }
 0x4f4   : > { %v1797_v47 = vpack.c.b16 %v1796_v3, %v1796_v3  ;;  %v1849_v39 = vpop.permute.xlu1 %1848  ;;  %v1357_v8 = vrot.slane %v1296_v53, %v3037_v16 }
 0x4f5   : > { %v1857_v22 = vrot.slane %v1849_v39, %v3032_v46 }
 0x4f6   : > { %2272 = vmatmul.mubr.msk.bf16.vlgmr.msra.gmra.mrb[16].mxu0 %vm955_vm10, %v1797_v47 }
 0x4f7   : > { %v1858_v28 = vsel %vm875_vm2, %v1857_v22, %v1853_v48  ;;  %v1302_v9 = vpop.permute.xlu0 %1301 }
 0x4f8   : > { %v1859_v21 = vpack.c.b16 %v1858_v28, %v1858_v28  ;;  %v1275_v12 = vpop.permute.xlu1 %1274  ;;  %v1366_v14 = vrot.slane %v1302_v9, %v3037_v16 }
 0x4f9   : > { %v1325_v56 = vrot.slane %v1275_v12, %v3032_v46 }
 0x4fa   : > { %2278 = vmatmul.mubr.msk.bf16.vlgmr.msra.gmra.mrb[28].mxu1 %vm955_vm10, %v1859_v21 }
 0x4fb   : > { %v1308_v29 = vpop.permute.xlu0 %1307  ;;  %v1326_v26 = vsel %vm875_vm2, %v1325_v56, %v1321_v60 }
 0x4fc   : > { %v1281_v20 = vpop.permute.xlu1 %1280  ;;  %v1375_v36 = vrot.slane %v1308_v29, %v3037_v16 }
 0x4fd   : > { %v1334_v25 = vrot.slane %v1281_v20, %v3032_v46 }
 0x4ff   : > { %v1335_v63 = vsel %vm875_vm2, %v1334_v25, %v1330_v37  ;;  %v1314_v6 = vpop.permute.xlu0 %1313 }
 0x500   : > { %v1287_v23 = vpop.permute.xlu1 %1286  ;;  %v1390_v15 = vsel %vm940_vm3, %v1335_v63, %v1326_v26  ;;  %v1384_v52 = vrot.slane %v1314_v6, %v3037_v16 }
 0x501   : > { %v1343_v44 = vrot.slane %v1287_v23, %v3032_v46 }
 0x503   : > { %v1344_v10 = vsel %vm875_vm2, %v1343_v44, %v1339_v57 }
 0x504   : > { %v1293_v0 = vpop.permute.xlu1 %1292  ;;  %v1391_v2 = vsel %vm942_vm4, %v1344_v10, %v1390_v15 }
 0x505   : > { %v1352_v51 = vrot.slane %v1293_v0, %v3032_v46 }
 0x507   : > { %v1353_v30 = vsel %vm875_vm2, %v1352_v51, %v1348_v61 }
 0x508   : > { %v1299_v55 = vpop.permute.xlu1 %1298  ;;  %v1392_v34 = vsel %vm944_vm5, %v1353_v30, %v1391_v2 }
 0x509   : > { %v1361_v58 = vrot.slane %v1299_v55, %v3032_v46 }
 0x50b   : > { %v1362_v24 = vsel %vm875_vm2, %v1361_v58, %v1357_v8 }
 0x50c   : > { %v1305_v11 = vpop.permute.xlu1 %1304  ;;  %v1393_v5 = vsel %vm946_vm6, %v1362_v24, %v1392_v34 }
 0x50d   : > { %v1370_v1 = vrot.slane %v1305_v11, %v3032_v46 }
 0x50f   : > { %v1371_v32 = vsel %vm875_vm2, %v1370_v1, %v1366_v14 }
 0x510   : > { %v1311_v33 = vpop.permute.xlu1 %1310  ;;  %v1394_v31 = vsel %vm948_vm7, %v1371_v32, %v1393_v5 }
 0x511   : > { %v1379_v41 = vrot.slane %v1311_v33, %v3032_v46 }
 0x513   : > { %v1380_v35 = vsel %vm875_vm2, %v1379_v41, %v1375_v36 }
 0x514   : > { %v1317_v49 = vpop.permute.xlu1 %1316  ;;  %v1395_v54 = vsel %vm950_vm8, %v1380_v35, %v1394_v31 }
 0x515   : > { %v1388_v17 = vrot.slane %v1317_v49, %v3032_v46 }
 0x517   : > { %v1389_v4 = vsel %vm875_vm2, %v1388_v17, %v1384_v52 }
 0x518   : > { %v1396_v38 = vsel %vm952_vm9, %v1389_v4, %v1395_v54 }
 0x519   : > { %1398 = vst.msk [vmem:[%s374_s10] sm:$0xff] %vm955_vm10, %v1396_v38 }
 0x51a   : > { %2547 = shalt.err (!%p2544_p7)
}
 0x51b   : > { %s2548_s17 = scalar_lea.hbm %s3366_s23, 128  ;;  %s2552_s19 = scalar_lea.hbm %s3450_s7, 256 }
 0x51c   : > { %p2549_p2 = scmp.ne.s32.totalorder %s3366_s23, %s2548_s17  ;;  %p2553_p0 = scmp.lt.u32.totalorder %s3366_s23, %s3450_s7 }
 0x51d   : > { %p2554_p9 = scmp.lt.u32.totalorder %s2552_s19, %s2548_s17  ;;  %p2556_p1 = scmp.lt.u32.totalorder %s2548_s17, %s3366_s23 }
 0x51e   : > { %p2550_p8 = pnand %p2549_p2, %p3482_p13 }
 0x51f   : > { %p2555_p12 = por %p2554_p9, %p2553_p0 }
 0x520   : > { %p2551_p11 = pneg %p2550_p8 }
 0x521   : > { %p2557_p6 = por %p2556_p1, %p2555_p12 }
 0x523   : > { %p2558_p10 = pnand %p2557_p6, %p2551_p11 }
 0x525   : > { %2561 = shalt.err (!%p2558_p10)
}
 0x526   : > { %2294 = dma.vmem_to_hbm [thread:$0]  (%p3482_p13), %s1960_s21, 128, %s3366_s23, %s1933_s22  }
 0x527   : > { %s367_s10 = scalar_lea.vmem [#allocation10], %s2925_s9  ;;  %s3398_s21 = scalar_lea.hbm %s3449_s6, %s2152_s18 }
 0x528   : > { %s1946_s20 = sshll.u32 %s367_s10, 4  ;;  %s1928_s9 = scalar_lea.sflag [#allocation4], %s2913_s26  ;;  %s3400_s20 = int_to_ptr.vmem [resolvable:$true] %s1946_s20 }
 0x529   : > { %s2562_s22 = scalar_lea.vmem %s3400_s20, 128  ;;  %s2657_s28 = smov [#allocation10]  }
 0x52a   : > { %p2563_p4 = scmp.ne.s32.totalorder %s3400_s20, %s2562_s22  ;;  %s2566_s14 = sshll.u32 %s2657_s28, 4  ;;  %s2567_s14 = int_to_ptr.vmem [resolvable:$false] %s2566_s14 }
 0x52b   : > { %s2568_s18 = scalar_lea.vmem %s2567_s14, 256  ;;  %p2569_p7 = scmp.lt.s32.totalorder %s3400_s20, %s2567_s14 }
 0x52c   : > { %p2564_p5 = pnand %p2563_p4, %p3482_p13  ;;  %p2570_p2 = scmp.lt.s32.totalorder %s2568_s18, %s2562_s22 }
 0x52e   : > { %p2565_p3 = pneg %p2564_p5  ;;  %p2571_p8 = por %p2570_p2, %p2569_p7 }
 0x530   : > { %p2572_p11 = pnand %p2571_p8, %p2565_p3 }
 0x59d   : > { %v1463_v46 = vpop.f32.mrb[4].mxu1 }
 0x59e   : > { %v2237_v16 = vpop.f32.mrb[5].mxu1 }
 0x59f   : > { %v1466_v13 = vpop.f32.mrb[6].mxu1 }
 0x5a0   : > { %v2238_v40 = vpop.f32.mrb[7].mxu1 }
 0x5a5   : > { %v1525_v42 = vpop.f32.mrb[8].mxu1 }
 0x5a6   : > { %v1911_v18 = vrot.slane %v1525_v42, 7  ;;  %v2243_v59 = vpop.f32.mrb[9].mxu1 }
 0x5a7   : > { %v1528_v7 = vpop.f32.mrb[10].mxu1 }
 0x5a8   : > { %v1912_v43 = vsel %vm940_vm3, %v1911_v18, %v1463_v46  ;;  %v2244_v27 = vpop.f32.mrb[11].mxu1 }
 0x5ad   : > { %v1587_v45 = vpop.f32.mrb[12].mxu1 }
 0x5ae   : > { %v1913_v62 = vrot.slane %v1587_v45, 6  ;;  %v2249_v3 = vpop.f32.mrb[13].mxu1 }
 0x5af   : > { %v1590_v19 = vpop.f32.mrb[14].mxu1 }
 0x5b0   : > { %v1914_v47 = vsel %vm942_vm4, %v1913_v62, %v1912_v43  ;;  %v2250_v39 = vpop.f32.mrb[15].mxu1 }
 0x5b5   : > { %v1649_v48 = vpop.f32.mrb[16].mxu1 }
 0x5b6   : > { %v1915_v22 = vrot.slane %v1649_v48, 5  ;;  %v2255_v28 = vpop.f32.mrb[17].mxu1 }
 0x5b7   : > { %v1652_v21 = vpop.f32.mrb[18].mxu1 }
 0x5b8   : > { %v1916_v12 = vsel %vm944_vm5, %v1915_v22, %v1914_v47  ;;  %v2256_v50 = vpop.f32.mrb[19].mxu1 }
 0x5bd   : > { %v1711_v20 = vpop.f32.mrb[20].mxu1 }
 0x5be   : > { %v1917_v53 = vrot.slane %v1711_v20, 4  ;;  %v2261_v23 = vpop.f32.mrb[21].mxu1 }
 0x5bf   : > { %v1714_v0 = vpop.f32.mrb[22].mxu1 }
 0x5c0   : > { %v1918_v9 = vsel %vm946_vm6, %v1917_v53, %v1916_v12  ;;  %v2262_v55 = vpop.f32.mrb[23].mxu1 }
 0x5c5   : > { %v1773_v25 = vpop.f32.mrb[24].mxu1 }
 0x5c6   : > { %v1919_v29 = vrot.slane %v1773_v25, 3  ;;  %v2267_v44 = vpop.f32.mrb[25].mxu1 }
 0x5c7   : > { %v1776_v11 = vpop.f32.mrb[26].mxu1 }
 0x5c8   : > { %v1920_v37 = vsel %vm948_vm7, %v1919_v29, %v1918_v9  ;;  %v2268_v56 = vpop.f32.mrb[27].mxu1 }
 0x5c9   : > { %v1835_v51 = vpop.f32.mrb[16].mxu0 }
 0x5ca   : > { %v1921_v57 = vrot.slane %v1835_v51, 2  ;;  %v2273_v58 = vpop.f32.mrb[17].mxu0 }
 0x5cb   : > { %v1838_v60 = vpop.f32.mrb[18].mxu0 }
 0x5cc   : > { %v1922_v61 = vsel %vm950_vm8, %v1921_v57, %v1920_v37  ;;  %v2274_v63 = vpop.f32.mrb[19].mxu0 }
 0x5cd   : > { %v1897_v1 = vpop.f32.mrb[28].mxu1 }
 0x5ce   : > { %v1923_v8 = vrot.slane %v1897_v1, 1  ;;  %v2279_v10 = vpop.f32.mrb[29].mxu1 }
 0x5cf   : > { %v1900_v33 = vpop.f32.mrb[30].mxu1 }
 0x5d0   : > { %v1924_v14 = vsel %vm952_vm9, %v1923_v8, %v1922_v61  ;;  %v2280_v26 = vpop.f32.mrb[31].mxu1 }
 0x5d1   : > { %1926 = vst [vmem:[%s367_s10] sm:$0xff] %v1924_v14 }
 0x5d2   : > { %2575 = shalt.err (!%p2572_p11)
}
 0x5d3   : > { %s2576_s26 = scalar_lea.hbm %s3398_s21, 128  ;;  %s2580_s0 = scalar_lea.hbm %s3449_s6, 256 }
 0x5d4   : > { %p2577_p0 = scmp.ne.s32.totalorder %s3398_s21, %s2576_s26  ;;  %p2581_p1 = scmp.lt.u32.totalorder %s3398_s21, %s3449_s6 }
 0x5d5   : > { %p2582_p6 = scmp.lt.u32.totalorder %s2580_s0, %s2576_s26  ;;  %p2584_p4 = scmp.lt.u32.totalorder %s2576_s26, %s3398_s21 }
 0x5d6   : > { %p2578_p9 = pnand %p2577_p0, %p3482_p13 }
 0x5d7   : > { %p2583_p10 = por %p2582_p6, %p2581_p1 }
 0x5d8   : > { %p2579_p12 = pneg %p2578_p9 }
 0x5d9   : > { %p2585_p5 = por %p2584_p4, %p2583_p10 }
 0x5db   : > { %p2586_p3 = pnand %p2585_p5, %p2579_p12 }
 0x5dd   : > { %2589 = shalt.err (!%p2586_p3)
}
 0x5de   : > { %2293 = dma.vmem_to_hbm [thread:$0]  (%p3482_p13), %s3400_s20, 128, %s3398_s21, %s1928_s9  }
 0x5df PF: > { %s1971_s30 = sand.u32 1, %s2632_s24   ;;  %p3483_p7 = scmp.ne.s32.totalorder %s3463_s8, 0 }
 0x5e0   : > { %p3484_p2 = scmp.ge.s32.totalorder %s2644_s27, 2  ;;  %s1972_s19 = scalar_lea.sflag [#allocation4], %s1971_s30 }
 0x5e2   : > { %p2312_p8 = pnand %p3484_p2, %p3483_p7 }
 0x5e4   : > { %2623 = dma.done.wait (!%p2312_p8), %s1972_s19, 128  }
 0x5e5   : > { %2625 = vsyncadd (!%p2312_p8), %s1972_s19, 4294967168  ;;  %s1981_s29 = scalar_lea.sflag [#allocation12], %s1971_s30 }
 0x5e6   : > { %2627 = dma.done.wait (!%p2312_p8), %s1981_s29, 128  }
 0x5e7   : > { %2629 = vsyncadd (!%p2312_p8), %s1981_s29, 4294967168  ;;  %s3485_s16 = sld [smem:[#allocation19_spill]]  ;;  %s3486_s26 = sld [smem:[#allocation20_spill]] }
 0x5e8   : > { %p28_p13 = scmp.ge.s32.totalorder %s2814_s12, 4   ;;  %s3487_s24 = smov %s2636_s25 }
 0x5e9   : > { %s3489_s27 = smov %s2814_s12 }
 0x5ea   :  { %30 = sbr.rel (!%p28_p13) target bundleno = 14 (0xe), region = 127 }
 0x5ed   : > { %s3488_s25 = smov %s3485_s16 }
 0x5f1   :  { %1986 = vsyncpa [#allocation3], 1 }
 0x5f2   :  { %1988 = vsyncpa [#allocation3 + $0x1], 1 }
 0x5f3   :  { %1989 = vsyncpa [#allocation6], 1 }
 0x5f4   :  { %1991 = vsyncpa [#allocation6 + $0x1], 1 }
 0x5f5   :  { %1992 = vsyncpa [#allocation9], 1 }
 0x5f6   :  { %1993 = vsyncpa [#allocation4], 1 }
 0x5f7   :  { %1995 = vsyncpa [#allocation4 + $0x1], 1 }
 0x5f8   :  { %1996 = vsyncpa [#allocation12], 1 }
 0x5f9   :  { %1998 = vsyncpa [#allocation12 + $0x1], 1 }

</bundles_post_ra>
